<compile_context>
chip_gen: v6e
topology: v6e:2x2x1
jax: 0.10.0
libtpu: 0.0.40
codegen_flags: <defaults>
</compile_context>

<pallas_src>
import functools

import jax
import jax.numpy as jnp
from jax import lax
from jax.experimental import pallas as pl
from jax.experimental.pallas import tpu as pltpu

BN_EPS = 1e-5


def _round_up(v, m):
    return (v + m - 1) // m * m


def _bottleneck_kernel(x_ref, w1_ref, w2_ref, w3_ref, b1_ref, b2_ref, b3_ref,
                       o_ref, pad_ref, *, row_tile):
    # x_ref block: (1, H, W, Cin) -- full image; the row axis is tiled via the
    # grid with a 1-row halo recomputed from x.  o_ref block: (1, TH, W, Cout).
    _, H, W, Cin = x_ref.shape
    TH = row_tile
    P = w1_ref.shape[1]
    Cout = w3_ref.shape[1]
    Hp, Wp, _ = pad_ref.shape            # Hp = TH + 2, Wp = round_up(W + 2, 8)
    Lp = Hp * Wp
    M = TH * Wp                          # trimmed matmul M (no bottom zero rows)

    r = pl.program_id(1)
    row0 = r * TH                        # first absolute image row of this tile

    # --- conv1 (1x1, no bias) + folded-BN bias + relu on the TH tile rows ----
    xm = x_ref[0, pl.ds(row0, TH), :, :].reshape(TH * W, Cin)
    h1 = jnp.dot(xm.astype(jnp.bfloat16), w1_ref[...],
                 preferred_element_type=jnp.float32)           # (TH*W, P) f32
    h1 = jnp.maximum(h1 + b1_ref[...], 0.0)

    # --- stage h1 into the zero-bordered padded scratch -----------------------
    # pad[i, c] holds h1 of absolute row (row0 + i - 1); rows 0 / TH+1 are the
    # halo rows (zero at the image border), columns >= W are the conv 'SAME'
    # zero padding.  The border is re-zeroed every grid step (each core owns a
    # private scratch, so this must not be gated on program_id == 0); the
    # interior is fully overwritten anyway.
    zrow = jnp.zeros((Wp, P), pad_ref.dtype)
    pad_ref[0] = zrow
    pad_ref[TH + 1] = zrow
    pad_ref[1:TH + 1, W:Wp, :] = jnp.zeros((TH, Wp - W, P), pad_ref.dtype)
    pad_ref[1:TH + 1, 0:W, :] = h1.reshape(TH, W, P)

    # Halo rows: recompute conv1 for one extra row above / below the tile.
    @pl.when(r > 0)
    def _top_halo():
        xh = x_ref[0, row0 - 1, :, :]                          # (W, Cin)
        hh = jnp.dot(xh.astype(jnp.bfloat16), w1_ref[...],
                     preferred_element_type=jnp.float32)
        pad_ref[0, 0:W, :] = jnp.maximum(hh + b1_ref[...], 0.0)

    @pl.when(r < pl.num_programs(1) - 1)
    def _bottom_halo():
        xh = x_ref[0, row0 + TH, :, :]                         # (W, Cin)
        hh = jnp.dot(xh.astype(jnp.bfloat16), w1_ref[...],
                     preferred_element_type=jnp.float32)
        pad_ref[TH + 1, 0:W, :] = jnp.maximum(hh + b1_ref[...], 0.0)

    # --- conv2 (3x3, stride 1, pad 1) + folded-BN bias + relu ----------------
    # Output flat position p = y*Wp + x needs pad_flat[p + dy*Wp + dx - 1].
    # The dx = +/-1 offsets are two XLU rolls; the dy offsets are free
    # sublane-aligned static slices (Wp % 8 == 0).  Taps are cast to bf16
    # before the lane-concat so the f32 im2col is never materialized, and only
    # the first TH*Wp output rows are fed to the MXU.
    pad_flat = pad_ref[...].reshape(Lp, P)
    cols = (pltpu.roll(pad_flat, 1, axis=0).astype(jnp.bfloat16),       # dx=-1
            pad_flat.astype(jnp.bfloat16),                              # dx= 0
            pltpu.roll(pad_flat, Lp - 1, axis=0).astype(jnp.bfloat16))  # dx=+1
    taps = [cols[dx][dy * Wp:dy * Wp + M, :]
            for dy in range(3) for dx in range(3)]
    im2col = jnp.concatenate(taps, axis=1)                     # (M, 9P) bf16
    # TODO(synk): for P=64 stages on v6e, benchmark the sum-of-9-matmuls
    # accumulation form against this big-K concat.
    h2 = jnp.dot(im2col, w2_ref[...],
                 preferred_element_type=jnp.float32)           # (M, P) f32
    h2 = jnp.maximum(h2 + b2_ref[...], 0.0)

    # --- conv3 (1x1, no bias) + folded-BN bias --------------------------------
    if W % 8 == 0:
        # Aligned interior extraction first: conv3 never touches padded cols.
        h2i = h2.reshape(TH, Wp, P)[:, 0:W, :].reshape(TH * W, P)
        h3 = jnp.dot(h2i.astype(jnp.bfloat16), w3_ref[...],
                     preferred_element_type=jnp.float32)       # (TH*W, Cout)
        h3 = (h3 + b3_ref[...]).reshape(TH, W, Cout)
    else:
        # Misaligned interior slice: keep conv3 on the padded-W domain and
        # extract afterwards.
        h3 = jnp.dot(h2.astype(jnp.bfloat16), w3_ref[...],
                     preferred_element_type=jnp.float32)       # (M, Cout)
        h3 = (h3 + b3_ref[...]).reshape(TH, Wp, Cout)[:, 0:W, :]

    # --- residual add (f32) + final relu --------------------------------------
    xres = x_ref[0, pl.ds(row0, TH), :, :].astype(jnp.float32)  # (TH, W, Cin)
    o_ref[0] = jnp.maximum(h3 + xres, 0.0).astype(o_ref.dtype)


def fold_bn(gamma, beta, mean, var):
    s = gamma / jnp.sqrt(var + BN_EPS)
    b = beta - mean * s
    return s, b


def _pick_row_tile(h):
    # Largest divisor of H that is <= 16: keeps padded-domain temporaries small
    # and provides a second "parallel" grid axis for megacore / v7x.
    for t in range(min(h, 16), 0, -1):
        if h % t == 0:
            return t
    return h


def _vmem_limit_bytes(H, W, TH, Wp, Cin, P, Cout, act_bytes):
    Lp = (TH + 2) * Wp
    M = TH * Wp
    est = 0
    est += 2 * H * W * Cin * act_bytes                 # x block (double buffered)
    est += 2 * TH * W * Cout * act_bytes               # out block (double buffered)
    est += 2 * 2 * (Cin * P + 9 * P * P + P * Cout)    # bf16 weights (x2 buffers)
    est += 2 * 4 * (2 * P + Cout)                      # f32 biases  (x2 buffers)
    est += 4 * Lp * P                                  # pad scratch (f32)
    est += 2 * 4 * Lp * P + 3 * 2 * Lp * P             # rolled f32 + bf16 columns
    est += 2 * M * 9 * P                               # bf16 im2col
    est += 4 * M * P + 2 * 4 * TH * W * max(P, Cout)   # h2 / h3 / residual f32
    # 2x headroom for compiler temporaries; clamp to sane bounds (v7x physical
    # VMEM is 64 MiB -- rely on the row tiling to keep est small there).
    return int(min(96 * 2 ** 20, max(32 * 2 ** 20, 2 * est)))


def bottleneck_forward(x, w1, w2_hwio, w3, bn1, bn2, bn3, *, row_tile=None):
    """x: (N, H, W, Cin) NHWC (f32 or bf16).  w1: (Cin, P), w2_hwio: (3,3,P,P)
    HWIO, w3: (P, Cout).  bn* = (gamma, beta, mean, var) running stats."""
    N, H, W, Cin = x.shape
    P = w1.shape[1]
    Cout = w3.shape[1]
    assert Cout == Cin, "downsample=None requires inplanes == planes * 4"
    # TODO(synk): stride != 1 / downsample branches of the module need a
    # separate path (strided conv2 + 1x1 projection on the residual).

    if row_tile is None:
        row_tile = _pick_row_tile(H)
    assert H % row_tile == 0, (H, row_tile)
    R = H // row_tile

    s1, b1 = fold_bn(*bn1)
    s2, b2 = fold_bn(*bn2)
    s3, b3 = fold_bn(*bn3)

    # Fold BN scales into conv output channels; weights in bf16 for the MXU.
    w1f = (w1 * s1[None, :]).astype(jnp.bfloat16)                    # (Cin, P)
    w2f = (w2_hwio * s2[None, None, None, :]).reshape(9 * P, P)
    w2f = w2f.astype(jnp.bfloat16)                                   # (9P, P)
    w3f = (w3 * s3[None, :]).astype(jnp.bfloat16)                    # (P, Cout)
    b1 = b1[None, :].astype(jnp.float32)
    b2 = b2[None, :].astype(jnp.float32)
    b3 = b3[None, :].astype(jnp.float32)

    Wp = _round_up(W + 2, 8)
    assert Wp >= W + 2          # flat-roll wraparound relies on >=2 zero cols
    act_bytes = jnp.dtype(x.dtype).itemsize

    kernel = functools.partial(_bottleneck_kernel, row_tile=row_tile)

    # TODO(synk): single-buffer the grid-invariant weight/bias specs
    # (pipeline_mode=pl.Buffered(1)) for the P>=256 stages once the target JAX
    # version is pinned; saves a few MB of VMEM on v7x.
    return pl.pallas_call(
        kernel,
        out_shape=jax.ShapeDtypeStruct((N, H, W, Cout), x.dtype),
        grid_spec=pltpu.PrefetchScalarGridSpec(
            num_scalar_prefetch=0,
            grid=(N, R),
            in_specs=[
                pl.BlockSpec((1, H, W, Cin), lambda n, r: (n, 0, 0, 0)),
                pl.BlockSpec((Cin, P), lambda n, r: (0, 0)),
                pl.BlockSpec((9 * P, P), lambda n, r: (0, 0)),
                pl.BlockSpec((P, Cout), lambda n, r: (0, 0)),
                pl.BlockSpec((1, P), lambda n, r: (0, 0)),
                pl.BlockSpec((1, P), lambda n, r: (0, 0)),
                pl.BlockSpec((1, Cout), lambda n, r: (0, 0)),
            ],
            out_specs=pl.BlockSpec((1, row_tile, W, Cout),
                                   lambda n, r: (n, r, 0, 0)),
            scratch_shapes=[pltpu.VMEM((row_tile + 2, Wp, P), jnp.float32)],
        ),
        compiler_params=pltpu.CompilerParams(
            dimension_semantics=("parallel", "parallel"),
            vmem_limit_bytes=_vmem_limit_bytes(H, W, row_tile, Wp, Cin, P,
                                               Cout, act_bytes),
        ),
    )(x, w1f, w2f, w3f, b1, b2, b3)


def reference_forward(x, w1, w2_hwio, w3, bn1, bn2, bn3):
    def bn(y, p):
        g, b, m, v = p
        return (y - m) / jnp.sqrt(v + BN_EPS) * g + b

    h = jnp.einsum('nhwc,co->nhwo', x, w1)
    h = jax.nn.relu(bn(h, bn1))
    h = lax.conv_general_dilated(h, w2_hwio, (1, 1), 'SAME',
                                 dimension_numbers=('NHWC', 'HWIO', 'NHWC'))
    h = jax.nn.relu(bn(h, bn2))
    h = jnp.einsum('nhwc,co->nhwo', h, w3)
    h = bn(h, bn3)
    return jax.nn.relu(h + x)


if __name__ == "__main__":
    # ResNet-like channel counts (P >= 64, Cin >= 256) with small batch/spatial
    # so the script stays fast.
    N, H, W = 2, 8, 8
    planes = 64
    inplanes = planes * 4
    cout = planes * 4

    key = jax.random.PRNGKey(0)
    ks = jax.random.split(key, 8)

    x = jax.random.normal(ks[0], (N, H, W, inplanes), jnp.float32)

    # Conv weights (no bias), fan-in scaled so activations stay O(1).
    w1 = jax.random.normal(ks[1], (inplanes, planes), jnp.float32) * inplanes ** -0.5
    w2_hwio = (jax.random.normal(ks[2], (3, 3, planes, planes), jnp.float32)
               * (9 * planes) ** -0.5)
    w3 = jax.random.normal(ks[3], (planes, cout), jnp.float32) * planes ** -0.5

    # BatchNorm params (inference mode: folded running stats + affine).
    # TODO(synk): training-mode BatchNorm (batch statistics) is not reproduced.
    def bn_params(k, c):
        k1, k2, k3, k4 = jax.random.split(k, 4)
        gamma = 1.0 + 0.1 * jax.random.normal(k1, (c,), jnp.float32)
        beta = 0.1 * jax.random.normal(k2, (c,), jnp.float32)
        mean = 0.1 * jax.random.normal(k3, (c,), jnp.float32)
        var = jnp.abs(jax.random.normal(k4, (c,), jnp.float32)) + 0.5
        return gamma, beta, mean, var

    bn1 = bn_params(ks[4], planes)
    bn2 = bn_params(ks[5], planes)
    bn3 = bn_params(ks[6], cout)

    # row_tile=4 -> 2 row tiles per image, exercising the halo path.
    out = bottleneck_forward(x, w1, w2_hwio, w3, bn1, bn2, bn3, row_tile=4)
    out = jax.block_until_ready(out)

    ref = reference_forward(x, w1, w2_hwio, w3, bn1, bn2, bn3)
    ref = jax.block_until_ready(ref)

    assert out.shape == (N, H, W, cout)
    max_err = float(jnp.max(jnp.abs(out - ref)))
    mean_err = float(jnp.mean(jnp.abs(out - ref)))
    # bf16 matmul operands (f32 accumulation) through three layers => looser
    # elementwise tolerance than pure f32, plus a tight mean-error check.
    assert jnp.allclose(out, ref, atol=1e-1, rtol=1e-1), (max_err, mean_err)
    assert mean_err < 3e-2, (max_err, mean_err)

    # bf16 activation I/O path (the HBM-bound early-stage lever on v5e/v6e):
    # smoke run with a loose sanity check.
    out_bf16 = bottleneck_forward(x.astype(jnp.bfloat16), w1, w2_hwio, w3,
                                  bn1, bn2, bn3, row_tile=4)
    out_bf16 = jax.block_until_ready(out_bf16)
    assert out_bf16.shape == (N, H, W, cout)
    assert out_bf16.dtype == jnp.bfloat16
    bf16_mean_err = float(jnp.mean(jnp.abs(out_bf16.astype(jnp.float32) - ref)))
    assert bf16_mean_err < 1e-1, bf16_mean_err

    print("KERNEL_OK")
</pallas_src>

<mosaic_0001>
module attributes {stable_mosaic.version = 11 : i64} {
  func.func @_bottleneck_kernel(%arg0: i32, %arg1: i32, %arg2: memref<1x8x8x256xf32, #tpu.memory_space<vmem>>, %arg3: memref<256x64xbf16, #tpu.memory_space<vmem>>, %arg4: memref<576x64xbf16, #tpu.memory_space<vmem>>, %arg5: memref<64x256xbf16, #tpu.memory_space<vmem>>, %arg6: memref<1x64xf32, #tpu.memory_space<vmem>>, %arg7: memref<1x64xf32, #tpu.memory_space<vmem>>, %arg8: memref<1x256xf32, #tpu.memory_space<vmem>>, %arg9: memref<1x4x8x256xf32, #tpu.memory_space<vmem>>, %arg10: memref<6x16x64xf32, #tpu.memory_space<vmem>>) attributes {dimension_semantics = [#tpu.dimension_semantics<parallel>, #tpu.dimension_semantics<parallel>], iteration_bounds = array<i64: 2, 2>, scalar_prefetch = 0 : i64, scratch_operands = 1 : i64, tpu.core_type = #tpu.core_type<tc>, window_params = [{transform_indices = @transform_0, window_bounds = array<i64: 1, 8, 8, 256>}, {pipeline_mode = #tpu.pipeline_mode<synchronous>, transform_indices = @transform_1, window_bounds = array<i64: 256, 64>}, {pipeline_mode = #tpu.pipeline_mode<synchronous>, transform_indices = @transform_2, window_bounds = array<i64: 576, 64>}, {pipeline_mode = #tpu.pipeline_mode<synchronous>, transform_indices = @transform_3, window_bounds = array<i64: 64, 256>}, {pipeline_mode = #tpu.pipeline_mode<synchronous>, transform_indices = @transform_4, window_bounds = array<i64: 1, 64>}, {pipeline_mode = #tpu.pipeline_mode<synchronous>, transform_indices = @transform_5, window_bounds = array<i64: 1, 64>}, {pipeline_mode = #tpu.pipeline_mode<synchronous>, transform_indices = @transform_6, window_bounds = array<i64: 1, 256>}, {transform_indices = @transform_7, window_bounds = array<i64: 1, 4, 8, 256>}]} {
    %c4_i32 = arith.constant 4 : i32
    %0 = arith.muli %arg1, %c4_i32 : i32
    %c0 = arith.constant 0 : index
    %1 = arith.index_cast %0 : i32 to index
    %c0_0 = arith.constant 0 : index
    %c0_1 = arith.constant 0 : index
    %2 = vector.load %arg2[%c0, %1, %c0_0, %c0_1] : memref<1x8x8x256xf32, #tpu.memory_space<vmem>>, vector<1x4x8x256xf32>
    %3 = vector.shape_cast %2 : vector<1x4x8x256xf32> to vector<4x8x256xf32>
    %4 = vector.shape_cast %3 : vector<4x8x256xf32> to vector<32x256xf32>
    %5 = arith.truncf %4 : vector<32x256xf32> to vector<32x256xbf16>
    %c0_2 = arith.constant 0 : index
    %c0_3 = arith.constant 0 : index
    %6 = vector.load %arg3[%c0_2, %c0_3] : memref<256x64xbf16, #tpu.memory_space<vmem>>, vector<256x64xbf16>
    %cst = arith.constant dense<0.000000e+00> : vector<32x64xf32>
    %7 = tpu.matmul %5, %6, %cst {dimension_numbers = #tpu.dot_dimension_numbers<[1], [0], [0], [1], [0, 0, 1, 1], [], []>} : vector<32x256xbf16>, vector<256x64xbf16>, vector<32x64xf32> -> vector<32x64xf32>
    %c0_4 = arith.constant 0 : index
    %c0_5 = arith.constant 0 : index
    %8 = vector.load %arg6[%c0_4, %c0_5] : memref<1x64xf32, #tpu.memory_space<vmem>>, vector<1x64xf32>
    %9 = vector.broadcast %8 : vector<1x64xf32> to vector<32x64xf32>
    %10 = arith.addf %7, %9 : vector<32x64xf32>
    %cst_6 = arith.constant 0.000000e+00 : f32
    %11 = vector.broadcast %cst_6 : f32 to vector<32x64xf32>
    %12 = arith.maximumf %10, %11 : vector<32x64xf32>
    %cst_7 = arith.constant 0.000000e+00 : f32
    %13 = vector.broadcast %cst_7 : f32 to vector<16x64xf32>
    %c0_8 = arith.constant 0 : index
    %c0_9 = arith.constant 0 : index
    %c0_10 = arith.constant 0 : index
    %14 = vector.load %arg10[%c0_8, %c0_9, %c0_10] : memref<6x16x64xf32, #tpu.memory_space<vmem>>, vector<1x16x64xf32>
    %15 = vector.shape_cast %14 : vector<1x16x64xf32> to vector<16x64xf32>
    %16 = vector.shape_cast %13 : vector<16x64xf32> to vector<1x16x64xf32>
    tpu.vector_store %arg10[%c0_8, %c0_9, %c0_10], %16 {strides = array<i32>} : memref<6x16x64xf32, #tpu.memory_space<vmem>>, vector<1x16x64xf32>,
    %c5 = arith.constant 5 : index
    %c0_11 = arith.constant 0 : index
    %c0_12 = arith.constant 0 : index
    %17 = vector.load %arg10[%c5, %c0_11, %c0_12] : memref<6x16x64xf32, #tpu.memory_space<vmem>>, vector<1x16x64xf32>
    %18 = vector.shape_cast %17 : vector<1x16x64xf32> to vector<16x64xf32>
    %19 = vector.shape_cast %13 : vector<16x64xf32> to vector<1x16x64xf32>
    tpu.vector_store %arg10[%c5, %c0_11, %c0_12], %19 {strides = array<i32>} : memref<6x16x64xf32, #tpu.memory_space<vmem>>, vector<1x16x64xf32>,
    %cst_13 = arith.constant 0.000000e+00 : f32
    %20 = vector.broadcast %cst_13 : f32 to vector<4x8x64xf32>
    %c1 = arith.constant 1 : index
    %c8 = arith.constant 8 : index
    %c0_14 = arith.constant 0 : index
    %21 = vector.load %arg10[%c1, %c8, %c0_14] : memref<6x16x64xf32, #tpu.memory_space<vmem>>, vector<4x8x64xf32>
    tpu.vector_store %arg10[%c1, %c8, %c0_14], %20 {strides = array<i32>} : memref<6x16x64xf32, #tpu.memory_space<vmem>>, vector<4x8x64xf32>,
    %22 = vector.shape_cast %12 : vector<32x64xf32> to vector<4x8x64xf32>
    %c1_15 = arith.constant 1 : index
    %c0_16 = arith.constant 0 : index
    %c0_17 = arith.constant 0 : index
    %23 = vector.load %arg10[%c1_15, %c0_16, %c0_17] : memref<6x16x64xf32, #tpu.memory_space<vmem>>, vector<4x8x64xf32>
    tpu.vector_store %arg10[%c1_15, %c0_16, %c0_17], %22 {strides = array<i32>} : memref<6x16x64xf32, #tpu.memory_space<vmem>>, vector<4x8x64xf32>,
    %c0_i32 = arith.constant 0 : i32
    %24 = arith.cmpi sgt, %arg1, %c0_i32 : i32
    %25 = arith.extui %24 : i1 to i32
    %c0_i32_18 = arith.constant 0 : i32
    %26 = arith.cmpi ne, %25, %c0_i32_18 : i32
    scf.if %26 {
      %c1_i32_43 = arith.constant 1 : i32
      %73 = arith.subi %0, %c1_i32_43 : i32
      %c0_44 = arith.constant 0 : index
      %74 = arith.index_cast %73 : i32 to index
      %c0_45 = arith.constant 0 : index
      %c0_46 = arith.constant 0 : index
      %75 = vector.load %arg2[%c0_44, %74, %c0_45, %c0_46] : memref<1x8x8x256xf32, #tpu.memory_space<vmem>>, vector<1x1x8x256xf32>
      %76 = vector.shape_cast %75 : vector<1x1x8x256xf32> to vector<8x256xf32>
      %77 = arith.truncf %76 : vector<8x256xf32> to vector<8x256xbf16>
      %c0_47 = arith.constant 0 : index
      %c0_48 = arith.constant 0 : index
      %78 = vector.load %arg3[%c0_47, %c0_48] : memref<256x64xbf16, #tpu.memory_space<vmem>>, vector<256x64xbf16>
      %cst_49 = arith.constant dense<0.000000e+00> : vector<8x64xf32>
      %79 = tpu.matmul %77, %78, %cst_49 {dimension_numbers = #tpu.dot_dimension_numbers<[1], [0], [0], [1], [0, 0, 1, 1], [], []>} : vector<8x256xbf16>, vector<256x64xbf16>, vector<8x64xf32> -> vector<8x64xf32>
      %c0_50 = arith.constant 0 : index
      %c0_51 = arith.constant 0 : index
      %80 = vector.load %arg6[%c0_50, %c0_51] : memref<1x64xf32, #tpu.memory_space<vmem>>, vector<1x64xf32>
      %81 = vector.broadcast %80 : vector<1x64xf32> to vector<8x64xf32>
      %82 = arith.addf %79, %81 : vector<8x64xf32>
      %cst_52 = arith.constant 0.000000e+00 : f32
      %83 = vector.broadcast %cst_52 : f32 to vector<8x64xf32>
      %84 = arith.maximumf %82, %83 : vector<8x64xf32>
      %c0_53 = arith.constant 0 : index
      %c0_54 = arith.constant 0 : index
      %c0_55 = arith.constant 0 : index
      %85 = vector.load %arg10[%c0_53, %c0_54, %c0_55] : memref<6x16x64xf32, #tpu.memory_space<vmem>>, vector<1x8x64xf32>
      %86 = vector.shape_cast %85 : vector<1x8x64xf32> to vector<8x64xf32>
      %87 = vector.shape_cast %84 : vector<8x64xf32> to vector<1x8x64xf32>
      tpu.vector_store %arg10[%c0_53, %c0_54, %c0_55], %87 {strides = array<i32>} : memref<6x16x64xf32, #tpu.memory_space<vmem>>, vector<1x8x64xf32>,
    } else {
    }
    %c1_i32 = arith.constant 1 : i32
    %27 = arith.cmpi slt, %arg1, %c1_i32 : i32
    %28 = arith.extui %27 : i1 to i32
    %c0_i32_19 = arith.constant 0 : i32
    %29 = arith.cmpi ne, %28, %c0_i32_19 : i32
    scf.if %29 {
      %c4_i32_43 = arith.constant 4 : i32
      %73 = arith.addi %0, %c4_i32_43 : i32
      %c0_44 = arith.constant 0 : index
      %74 = arith.index_cast %73 : i32 to index
      %c0_45 = arith.constant 0 : index
      %c0_46 = arith.constant 0 : index
      %75 = vector.load %arg2[%c0_44, %74, %c0_45, %c0_46] : memref<1x8x8x256xf32, #tpu.memory_space<vmem>>, vector<1x1x8x256xf32>
      %76 = vector.shape_cast %75 : vector<1x1x8x256xf32> to vector<8x256xf32>
      %77 = arith.truncf %76 : vector<8x256xf32> to vector<8x256xbf16>
      %c0_47 = arith.constant 0 : index
      %c0_48 = arith.constant 0 : index
      %78 = vector.load %arg3[%c0_47, %c0_48] : memref<256x64xbf16, #tpu.memory_space<vmem>>, vector<256x64xbf16>
      %cst_49 = arith.constant dense<0.000000e+00> : vector<8x64xf32>
      %79 = tpu.matmul %77, %78, %cst_49 {dimension_numbers = #tpu.dot_dimension_numbers<[1], [0], [0], [1], [0, 0, 1, 1], [], []>} : vector<8x256xbf16>, vector<256x64xbf16>, vector<8x64xf32> -> vector<8x64xf32>
      %c0_50 = arith.constant 0 : index
      %c0_51 = arith.constant 0 : index
      %80 = vector.load %arg6[%c0_50, %c0_51] : memref<1x64xf32, #tpu.memory_space<vmem>>, vector<1x64xf32>
      %81 = vector.broadcast %80 : vector<1x64xf32> to vector<8x64xf32>
      %82 = arith.addf %79, %81 : vector<8x64xf32>
      %cst_52 = arith.constant 0.000000e+00 : f32
      %83 = vector.broadcast %cst_52 : f32 to vector<8x64xf32>
      %84 = arith.maximumf %82, %83 : vector<8x64xf32>
      %c5_53 = arith.constant 5 : index
      %c0_54 = arith.constant 0 : index
      %c0_55 = arith.constant 0 : index
      %85 = vector.load %arg10[%c5_53, %c0_54, %c0_55] : memref<6x16x64xf32, #tpu.memory_space<vmem>>, vector<1x8x64xf32>
      %86 = vector.shape_cast %85 : vector<1x8x64xf32> to vector<8x64xf32>
      %87 = vector.shape_cast %84 : vector<8x64xf32> to vector<1x8x64xf32>
      tpu.vector_store %arg10[%c5_53, %c0_54, %c0_55], %87 {strides = array<i32>} : memref<6x16x64xf32, #tpu.memory_space<vmem>>, vector<1x8x64xf32>,
    } else {
    }
    %c0_20 = arith.constant 0 : index
    %c0_21 = arith.constant 0 : index
    %c0_22 = arith.constant 0 : index
    %30 = vector.load %arg10[%c0_20, %c0_21, %c0_22] : memref<6x16x64xf32, #tpu.memory_space<vmem>>, vector<6x16x64xf32>
    %31 = vector.shape_cast %30 : vector<6x16x64xf32> to vector<96x64xf32>
    %c1_i32_23 = arith.constant 1 : i32
    %32 = tpu.dynamic_rotate %31 by %c1_i32_23 dim 0 : vector<96x64xf32>, i32 -> vector<96x64xf32>
    %33 = arith.truncf %32 : vector<96x64xf32> to vector<96x64xbf16>
    %34 = arith.truncf %31 : vector<96x64xf32> to vector<96x64xbf16>
    %c95_i32 = arith.constant 95 : i32
    %35 = tpu.dynamic_rotate %31 by %c95_i32 dim 0 : vector<96x64xf32>, i32 -> vector<96x64xf32>
    %36 = arith.truncf %35 : vector<96x64xf32> to vector<96x64xbf16>
    %37 = vector.extract_strided_slice %33 {offsets = [0, 0], sizes = [64, 64], strides = [1, 1]} : vector<96x64xbf16> to vector<64x64xbf16>
    %38 = vector.extract_strided_slice %34 {offsets = [0, 0], sizes = [64, 64], strides = [1, 1]} : vector<96x64xbf16> to vector<64x64xbf16>
    %39 = vector.extract_strided_slice %36 {offsets = [0, 0], sizes = [64, 64], strides = [1, 1]} : vector<96x64xbf16> to vector<64x64xbf16>
    %40 = vector.extract_strided_slice %33 {offsets = [16, 0], sizes = [64, 64], strides = [1, 1]} : vector<96x64xbf16> to vector<64x64xbf16>
    %41 = vector.extract_strided_slice %34 {offsets = [16, 0], sizes = [64, 64], strides = [1, 1]} : vector<96x64xbf16> to vector<64x64xbf16>
    %42 = vector.extract_strided_slice %36 {offsets = [16, 0], sizes = [64, 64], strides = [1, 1]} : vector<96x64xbf16> to vector<64x64xbf16>
    %43 = vector.extract_strided_slice %33 {offsets = [32, 0], sizes = [64, 64], strides = [1, 1]} : vector<96x64xbf16> to vector<64x64xbf16>
    %44 = vector.extract_strided_slice %34 {offsets = [32, 0], sizes = [64, 64], strides = [1, 1]} : vector<96x64xbf16> to vector<64x64xbf16>
    %45 = vector.extract_strided_slice %36 {offsets = [32, 0], sizes = [64, 64], strides = [1, 1]} : vector<96x64xbf16> to vector<64x64xbf16>
    %46 = tpu.concatenate %37, %38, %39, %40, %41, %42, %43, %44, %45 in 1 : vector<64x64xbf16>, vector<64x64xbf16>, vector<64x64xbf16>, vector<64x64xbf16>, vector<64x64xbf16>, vector<64x64xbf16>, vector<64x64xbf16>, vector<64x64xbf16>, vector<64x64xbf16> -> vector<64x576xbf16>
    %c0_24 = arith.constant 0 : index
    %c0_25 = arith.constant 0 : index
    %47 = vector.load %arg4[%c0_24, %c0_25] : memref<576x64xbf16, #tpu.memory_space<vmem>>, vector<576x64xbf16>
    %cst_26 = arith.constant dense<0.000000e+00> : vector<64x64xf32>
    %48 = tpu.matmul %46, %47, %cst_26 {dimension_numbers = #tpu.dot_dimension_numbers<[1], [0], [0], [1], [0, 0, 1, 1], [], []>} : vector<64x576xbf16>, vector<576x64xbf16>, vector<64x64xf32> -> vector<64x64xf32>
    %c0_27 = arith.constant 0 : index
    %c0_28 = arith.constant 0 : index
    %49 = vector.load %arg7[%c0_27, %c0_28] : memref<1x64xf32, #tpu.memory_space<vmem>>, vector<1x64xf32>
    %50 = vector.broadcast %49 : vector<1x64xf32> to vector<64x64xf32>
    %51 = arith.addf %48, %50 : vector<64x64xf32>
    %cst_29 = arith.constant 0.000000e+00 : f32
    %52 = vector.broadcast %cst_29 : f32 to vector<64x64xf32>
    %53 = arith.maximumf %51, %52 : vector<64x64xf32>
    %54 = vector.shape_cast %53 : vector<64x64xf32> to vector<4x16x64xf32>
    %55 = vector.extract_strided_slice %54 {offsets = [0, 0, 0], sizes = [4, 8, 64], strides = [1, 1, 1]} : vector<4x16x64xf32> to vector<4x8x64xf32>
    %56 = vector.shape_cast %55 : vector<4x8x64xf32> to vector<32x64xf32>
    %57 = arith.truncf %56 : vector<32x64xf32> to vector<32x64xbf16>
    %c0_30 = arith.constant 0 : index
    %c0_31 = arith.constant 0 : index
    %58 = vector.load %arg5[%c0_30, %c0_31] : memref<64x256xbf16, #tpu.memory_space<vmem>>, vector<64x256xbf16>
    %cst_32 = arith.constant dense<0.000000e+00> : vector<32x256xf32>
    %59 = tpu.matmul %57, %58, %cst_32 {dimension_numbers = #tpu.dot_dimension_numbers<[1], [0], [0], [1], [0, 0, 1, 1], [], []>} : vector<32x64xbf16>, vector<64x256xbf16>, vector<32x256xf32> -> vector<32x256xf32>
    %c0_33 = arith.constant 0 : index
    %c0_34 = arith.constant 0 : index
    %60 = vector.load %arg8[%c0_33, %c0_34] : memref<1x256xf32, #tpu.memory_space<vmem>>, vector<1x256xf32>
    %61 = vector.broadcast %60 : vector<1x256xf32> to vector<32x256xf32>
    %62 = arith.addf %59, %61 : vector<32x256xf32>
    %63 = vector.shape_cast %62 : vector<32x256xf32> to vector<4x8x256xf32>
    %c0_35 = arith.constant 0 : index
    %64 = arith.index_cast %0 : i32 to index
    %c0_36 = arith.constant 0 : index
    %c0_37 = arith.constant 0 : index
    %65 = vector.load %arg2[%c0_35, %64, %c0_36, %c0_37] : memref<1x8x8x256xf32, #tpu.memory_space<vmem>>, vector<1x4x8x256xf32>
    %66 = vector.shape_cast %65 : vector<1x4x8x256xf32> to vector<4x8x256xf32>
    %67 = arith.addf %63, %66 : vector<4x8x256xf32>
    %cst_38 = arith.constant 0.000000e+00 : f32
    %68 = vector.broadcast %cst_38 : f32 to vector<4x8x256xf32>
    %69 = arith.maximumf %67, %68 : vector<4x8x256xf32>
    %c0_39 = arith.constant 0 : index
    %c0_40 = arith.constant 0 : index
    %c0_41 = arith.constant 0 : index
    %c0_42 = arith.constant 0 : index
    %70 = vector.load %arg9[%c0_39, %c0_40, %c0_41, %c0_42] : memref<1x4x8x256xf32, #tpu.memory_space<vmem>>, vector<1x4x8x256xf32>
    %71 = vector.shape_cast %70 : vector<1x4x8x256xf32> to vector<4x8x256xf32>
    %72 = vector.shape_cast %69 : vector<4x8x256xf32> to vector<1x4x8x256xf32>
    tpu.vector_store %arg9[%c0_39, %c0_40, %c0_41, %c0_42], %72 {strides = array<i32>} : memref<1x4x8x256xf32, #tpu.memory_space<vmem>>, vector<1x4x8x256xf32>,
    return
  }
  func.func @transform_0(%arg0: i32, %arg1: i32) -> (i32, i32, i32, i32) {
    %c0_i32 = arith.constant 0 : i32
    %c0_i32_0 = arith.constant 0 : i32
    %c0_i32_1 = arith.constant 0 : i32
    %c0_i32_2 = arith.constant 0 : i32
    return %arg0, %c0_i32, %c0_i32_0, %c0_i32_1 : i32, i32, i32, i32
  }
  func.func @transform_1(%arg0: i32, %arg1: i32) -> (i32, i32) {
    %c0_i32 = arith.constant 0 : i32
    %c0_i32_0 = arith.constant 0 : i32
    %c0_i32_1 = arith.constant 0 : i32
    return %c0_i32, %c0_i32_0 : i32, i32
  }
  func.func @transform_2(%arg0: i32, %arg1: i32) -> (i32, i32) {
    %c0_i32 = arith.constant 0 : i32
    %c0_i32_0 = arith.constant 0 : i32
    %c0_i32_1 = arith.constant 0 : i32
    return %c0_i32, %c0_i32_0 : i32, i32
  }
  func.func @transform_3(%arg0: i32, %arg1: i32) -> (i32, i32) {
    %c0_i32 = arith.constant 0 : i32
    %c0_i32_0 = arith.constant 0 : i32
    %c0_i32_1 = arith.constant 0 : i32
    return %c0_i32, %c0_i32_0 : i32, i32
  }
  func.func @transform_4(%arg0: i32, %arg1: i32) -> (i32, i32) {
    %c0_i32 = arith.constant 0 : i32
    %c0_i32_0 = arith.constant 0 : i32
    %c0_i32_1 = arith.constant 0 : i32
    return %c0_i32, %c0_i32_0 : i32, i32
  }
  func.func @transform_5(%arg0: i32, %arg1: i32) -> (i32, i32) {
    %c0_i32 = arith.constant 0 : i32
    %c0_i32_0 = arith.constant 0 : i32
    %c0_i32_1 = arith.constant 0 : i32
    return %c0_i32, %c0_i32_0 : i32, i32
  }
  func.func @transform_6(%arg0: i32, %arg1: i32) -> (i32, i32) {
    %c0_i32 = arith.constant 0 : i32
    %c0_i32_0 = arith.constant 0 : i32
    %c0_i32_1 = arith.constant 0 : i32
    return %c0_i32, %c0_i32_0 : i32, i32
  }
  func.func @transform_7(%arg0: i32, %arg1: i32) -> (i32, i32, i32, i32) {
    %c0_i32 = arith.constant 0 : i32
    %c0_i32_0 = arith.constant 0 : i32
    %c0_i32_1 = arith.constant 0 : i32
    return %arg0, %arg1, %c0_i32, %c0_i32_0 : i32, i32, i32, i32
  }
}

</mosaic_0001>

<bundles_post_ra>
// kernel: tpu_custom_call.1
= control target key start
LH: loop header
LB: loop body
LE: loop exit
PB: predicated region body
PF: predicated region fallthrough
CT: control target
= control target key end

     0   :  { %s3188_s0 = inlined_call_operand.vmem [shape: f32[2,8,8,256], index: 0, kind: input, shape index: {}]   ;;  %s3189_s1 = inlined_call_operand.vmem [shape: bf16[256,64], index: 1, kind: input, shape index: {}]   ;;  %s3190_s2 = inlined_call_operand.vmem [shape: bf16[576,64], index: 2, kind: input, shape index: {}]   ;;  %s3191_s3 = inlined_call_operand.vmem [shape: bf16[64,256], index: 3, kind: input, shape index: {}]   ;;  %s3192_s4 = inlined_call_operand.vmem [shape: f32[1,64], index: 4, kind: input, shape index: {}]   ;;  %s3193_s5 = inlined_call_operand.vmem [shape: f32[1,64], index: 5, kind: input, shape index: {}]   ;;  %s3194_s6 = inlined_call_operand.vmem [shape: f32[1,256], index: 6, kind: input, shape index: {}]   ;;  %s3195_s7 = inlined_call_operand.hbm [shape: f32[2,8,8,256], index: 7, kind: output, shape index: {}]  }
   0x1   :  { %3200 = sst [smem:[#allocation9_spill]] %s3188_s0 }
   0x2   :  { %12 = vsyncpa [#allocation4], 0 }
   0x3   :  { %14 = vsyncpa [#allocation4 + $0x1], 0  ;;  %s2455_s24 = smov 0   ;;  %s2457_s25 = smov 0  }
   0x4   :  { %s2459_s26 = smov 0   ;;  %s2461_s27 = smov 0  }
   0x5   :  { %s2463_s28 = smov 0   ;;  %s2465_s29 = smov 0  }
   0x6   :  { %s2467_s30 = smov 0   ;;  %s2469_s8 = smov 0  }
   0x7 LB: > { %3201 = sst [smem:[#allocation6_spill]] %s2403_s30  ;;  %s1816_s9 = sadd.s32 4294967295, %s2407_s8   ;;  %s2407_s8 = sphi %s2469_s8, %s20_s8   ;;  %s2403_s30 = sphi %s2467_s30, %s3211_s30   ;;  %s2399_s29 = sphi %s2465_s29, %s3216_s29   ;;  %s2395_s28 = sphi %s2463_s28, %s3209_s28   ;;  %s2391_s27 = sphi %s2461_s27, %s3215_s27   ;;  %s2387_s26 = sphi %s2459_s26, %s3214_s26   ;;  %s2383_s25 = sphi %s2457_s25, %s3213_s25   ;;  %s2379_s24 = sphi %s2455_s24, %s3212_s24  }
   0x8   : > { %s1817_s10 = sadd.s32 4294967294, %s2407_s8   ;;  %s29_s11 = sadd.s32 1, %s2399_s29 }
   0x9   : > { %p30_p0 = scmp.ge.s32.totalorder %s29_s11, 2  ;;  %s32_s12 = sadd.s32 1, %s2403_s30 }
   0xa   : > { %p203_p1 = scmp.ne.s32.totalorder %s2387_s26, %s2383_s25  ;;  %p204_p2 = scmp.eq.s32.totalorder %s1816_s9, 3 }
   0xb   : > { %s3218_s11 = smov (%p30_p0, %s29_s11), 0  ;;  %s3220_s12 = smov (!%p30_p0, %s32_s12), %s2403_s30 }
   0xc   : > { %3202 = sst [smem:[#allocation7_spill]] %s3218_s11  ;;  %s189_s13 = ssub.s32 %s2399_s29, %s3218_s11 }
   0xd   : > { %p2506_p3 = por %p204_p2, %p203_p1  ;;  %p34_p4 = scmp.ge.s32.totalorder %s3220_s12, 2 }
   0xe   : > { %p209_p5 = scmp.ne.s32.totalorder %s2383_s25, %s2379_s24  ;;  %p210_p6 = scmp.eq.s32.totalorder %s1817_s10, 3 }
   0xf   : > { %p1820_p7 = scmp.ge.s32.totalorder %s2407_s8, 1  ;;  %s3222_s12 = smov (%p34_p4, %s3220_s12), 0 }
  0x10   : > { %3204 = sst [smem:[#allocation8_spill]] %s3222_s12  ;;  %p2515_p8 = por %p210_p6, %p209_p5 }
  0x11   : > { %p254_p9 = scmp.lt.s32.totalorder %s2407_s8, 5  ;;  %s188_s16 = ssub.s32 %s2403_s30, %s3222_s12 }
  0x12   : > { %s193_s17 = sadd.s32 1, %s2387_s26  ;;  %s190_s18 = sor.u32 %s189_s13, %s188_s16 }
  0x13   : > { %p255_p10 = pnand %p1820_p7, %p254_p9  ;;  %p191_p11 = scmp.eq.s32.totalorder %s190_s18, 0 }
  0x14   : > { %s3196_s20 = sand.u32 (!%p255_p10), 1, %s2383_s25   ;;  %p286_p12 = scmp.lt.s32.totalorder (!%p255_p10), %s2395_s28, 1 }
  0x15   : > { %s2524_s19 = scalar_select %p191_p11, %s2387_s26, %s193_s17  }
  0x16   : > { %258 = sbr.rel (%p255_p10) target bundleno = 1331 (0x533), region = 48  ;;  %s2530_s22 = sshll.u32 (!%p255_p10), %s3196_s20, 6 }
  0x17   : > { %s3206_s0 = sld [smem:[#allocation9_spill]] (!%p255_p10)  ;;  %s1947_s23 = sshll.u32 (!%p255_p10), %s2391_s27, 6 }
  0x18   : > { %s2615_s16 = scalar_lea.vmem (!%p255_p10), [#allocation3], %s2530_s22  ;;  %p1844_p13 = scmp.le.s32.totalorder (!%p255_p10), %s2391_s27, 0 }
  0x1b   : > { %v2219_v0 = vld [vmem:[%s3189_s1 + $0x78] sm:$0xff]   ;;  %v2221_v2 = vld [vmem:[%s3189_s1 + $0x70] sm:$0xff]   ;;  %v2223_v4 = vld [vmem:[%s3189_s1 + $0x68] sm:$0xff]   ;;  %s287_s10 = scalar_select %p286_p12, %s2395_s28, 1  ;;  %vm497_vm0 = vcmask 523264   ;;  %v2409_v28 = vmov 0.0  }
  0x1c   : > { %v2220_v1 = vld [vmem:[%s3189_s1 + $0x38] sm:$0xff]   ;;  %1951 = vmatprep.subr.bf16.mxu0 %v2219_v0  ;;  %2127 = vmatprep.subr.bf16.mxu1 %v2219_v0  ;;  %v2222_v3 = vld [vmem:[%s3189_s1 + $0x30] sm:$0xff]   ;;  %v2224_v5 = vld [vmem:[%s3189_s1 + $0x28] sm:$0xff]   ;;  %498 = vst.msk [vmem:[#allocation2] sm:$0xff] %vm497_vm0, %v2409_v28  ;;  %s3207_s20 = sshll.u32 (!%p1844_p13), %s2391_s27, 2 }
  0x1d   : > { %1952 = vmatpush3.bf16.msra.mxu0 %v2220_v1  ;;  %2135 = vmatpush3.bf16.msra.mxu1 %v2220_v1  ;;  %s1945_s13 = sshll.u32 %s287_s10, 7  ;;  %v2225_v6 = vld [vmem:[%s3189_s1 + $0x60] sm:$0xff]   ;;  %v2227_v8 = vld [vmem:[%s3189_s1 + $0x58] sm:$0xff]   ;;  %v2229_v12 = vld [vmem:[%s3189_s1 + $0x50] sm:$0xff]   ;;  %499 = vst.msk [vmem:[#allocation2 + $0x8] sm:$0xff] %vm497_vm0, %v2409_v28 }
  0x1e   : > { %1953 = vmatprep.subr.bf16.mxu0 %v2221_v2  ;;  %2128 = vmatprep.subr.bf16.mxu1 %v2221_v2  ;;  %s2558_s11 = scalar_lea.vmem %s3206_s0, %s1945_s13  ;;  %v2226_v7 = vld [vmem:[%s3189_s1 + $0x20] sm:$0xff]   ;;  %v2228_v9 = vld [vmem:[%s3189_s1 + $0x18] sm:$0xff]   ;;  %v2230_v17 = vld [vmem:[%s3189_s1 + $0x10] sm:$0xff]   ;;  %501 = vst.msk [vmem:[#allocation2 + $0x50] sm:$0xff] %vm497_vm0, %v2409_v28  ;;  %s1845_s0 = sadd.s32 (!%p1844_p13), 4294967295, %s3207_s20 }
  0x1f   : > { %s2568_s12 = scalar_lea.vmem %s2558_s11, %s1947_s23  ;;  %v2231_v18 = vld [vmem:[%s3189_s1 + $0x48] sm:$0xff]   ;;  %v2233_v20 = vld [vmem:[%s3189_s1 + $0x40] sm:$0xff]   ;;  %502 = vst.msk [vmem:[#allocation2 + $0x58] sm:$0xff] %vm497_vm0, %v2409_v28  ;;  %504 = vst.msk [vmem:[#allocation2 + $0x18] sm:$0xff] %vm497_vm0, %v2409_v28  ;;  %s1948_s30 = sshll.u32 (!%p1844_p13), %s1845_s0, 4 }
  0x20   : > { %v298_v10 = vld [vmem:[%s2568_s12 + $0x8] sm:$0xff]  ;;  %v300_v11 = vld [vmem:[%s2568_s12 + $0x18] sm:$0xff]  ;;  %v2234_v21 = vld [vmem:[%s3189_s1] sm:$0xff]   ;;  %505 = vst.msk [vmem:[#allocation2 + $0x28] sm:$0xff] %vm497_vm0, %v2409_v28  ;;  %s519_s21 = scalar_lea.vmem (!%p1844_p13), %s2558_s11, %s1948_s30 }
  0x21   : > { %1954 = vmatpush3.bf16.msra.mxu0 %v2222_v3  ;;  %2136 = vmatpush3.bf16.msra.mxu1 %v2222_v3  ;;  %v306_v13 = vpack.c.bf16 %v300_v11, %v298_v10  ;;  %v302_v14 = vld [vmem:[%s2568_s12 + $0x28] sm:$0xff]  ;;  %v304_v15 = vld [vmem:[%s2568_s12 + $0x38] sm:$0xff]  ;;  %v297_v22 = vld [vmem:[%s2568_s12] sm:$0xff]  ;;  %506 = vst.msk [vmem:[#allocation2 + $0x38] sm:$0xff] %vm497_vm0, %v2409_v28 }
  0x22   : > { %1955 = vmatprep.subr.bf16.mxu0 %v2223_v4  ;;  %2129 = vmatprep.subr.bf16.mxu1 %v2223_v4  ;;  %v308_v16 = vpack.c.bf16 %v304_v15, %v302_v14  ;;  %v2232_v19 = vld [vmem:[%s3189_s1 + $0x8] sm:$0xff]   ;;  %v299_v23 = vld [vmem:[%s2568_s12 + $0x10] sm:$0xff]  ;;  %v301_v24 = vld [vmem:[%s2568_s12 + $0x20] sm:$0xff]  ;;  %507 = vst.msk [vmem:[#allocation2 + $0x48] sm:$0xff] %vm497_vm0, %v2409_v28 }
  0x23   : > { %476 = vmatprep.mubr.bf16.mxu0 %v306_v13  ;;  %v303_v25 = vld [vmem:[%s2568_s12 + $0x30] sm:$0xff]  ;;  %v305_v26 = vpack.c.bf16 %v299_v23, %v297_v22  ;;  %v1827_v31 = vld [vmem:[%s3192_s4] ss:$0 sm:$0xff] }
  0x24   : > { %484 = vmatprep.mubr.bf16.mxu1 %v308_v16  ;;  %v307_v27 = vpack.c.bf16 %v303_v25, %v301_v24 }
  0x25   : > { %1956 = vmatpush3.bf16.msra.mxu0 %v2224_v5  ;;  %2137 = vmatpush3.bf16.msra.mxu1 %v2224_v5 }
  0x26   : > { %1957 = vmatprep.subr.bf16.mxu0 %v2225_v6  ;;  %2130 = vmatprep.subr.bf16.mxu1 %v2225_v6 }
  0x29   : > { %1958 = vmatpush3.bf16.msra.mxu0 %v2226_v7  ;;  %2138 = vmatpush3.bf16.msra.mxu1 %v2226_v7 }
  0x2a   : > { %1959 = vmatprep.subr.bf16.mxu0 %v2227_v8  ;;  %2131 = vmatprep.subr.bf16.mxu1 %v2227_v8 }
  0x2d   : > { %1960 = vmatpush3.bf16.msra.mxu0 %v2228_v9  ;;  %2139 = vmatpush3.bf16.msra.mxu1 %v2228_v9 }
  0x2e   : > { %1961 = vmatprep.subr.bf16.mxu0 %v2229_v12  ;;  %2132 = vmatprep.subr.bf16.mxu1 %v2229_v12 }
  0x31   : > { %1962 = vmatpush3.bf16.msra.mxu0 %v2230_v17  ;;  %2140 = vmatpush3.bf16.msra.mxu1 %v2230_v17 }
  0x32   : > { %1963 = vmatprep.subr.bf16.mxu0 %v2231_v18  ;;  %2133 = vmatprep.subr.bf16.mxu1 %v2231_v18 }
  0x35   : > { %1964 = vmatpush3.bf16.msra.mxu0 %v2232_v19  ;;  %2141 = vmatpush3.bf16.msra.mxu1 %v2232_v19 }
  0x36   : > { %1965 = vmatprep.subr.bf16.mxu0 %v2233_v20  ;;  %2134 = vmatprep.subr.bf16.mxu1 %v2233_v20 }
  0x39   : > { %1966 = vmatpush3.bf16.msra.mxu0 %v2234_v21  ;;  %2142 = vmatpush3.bf16.msra.mxu1 %v2234_v21 }
  0x3c   : > { %477 = vmatmul.mubr.bf16.vlgmr.msra.gmra.mxu0 %v305_v26  ;;  %485 = vmatmul.mubr.bf16.vlgmr.msra.gmra.mxu1 %v307_v27 }
  0xfc   : > { %v1967_v29 = vpop.f32.mrf.mxu0  ;;  %v1973_v30 = vpop.f32.mrf.mxu1 }
  0xfe   : > { %v1968_v32 = vpop.f32.mrf.mxu0  ;;  %v1974_v33 = vpop.f32.mrf.mxu1 }
  0xff   : > { %v1969_v34 = vadd.f32 %v1968_v32, %v1967_v29  ;;  %v1975_v35 = vadd.f32 %v1974_v33, %v1973_v30 }
 0x100   : > { %v1970_v36 = vpop.f32.mrf.mxu0  ;;  %v1976_v37 = vpop.f32.mrf.mxu1 }
 0x101   : > { %v479_v38 = vadd.f32 %v1969_v34, %v1827_v31  ;;  %v487_v39 = vadd.f32 %v1975_v35, %v1827_v31 }
 0x102   : > { %v1971_v40 = vpop.f32.mrf.mxu0  ;;  %v1977_v41 = vpop.f32.mrf.mxu1 }
 0x103   : > { %v493_v42 = vmax.f32 %v479_v38, 0.0  ;;  %v495_v43 = vmax.f32 %v487_v39, 0.0  ;;  %v1972_v44 = vadd.f32 %v1971_v40, %v1970_v36  ;;  %v1978_v45 = vadd.f32 %v1977_v41, %v1976_v37 }
 0x105   : > { %508 = vst.msk [vmem:[#allocation2 + $0x10] sm:$0xff] %vm497_vm0, %v493_v42  ;;  %510 = vst.msk [vmem:[#allocation2 + $0x30] sm:$0xff] %vm497_vm0, %v495_v43  ;;  %v482_v46 = vadd.f32 %v1972_v44, %v1827_v31  ;;  %v490_v47 = vadd.f32 %v1978_v45, %v1827_v31  ;;  %515 = sbr.rel (%p1844_p13) target bundleno = 501 (0x1f5), region = 52 }
 0x107   : > { %v494_v48 = vmax.f32 %v482_v46, 0.0  ;;  %v496_v49 = vmax.f32 %v490_v47, 0.0 }
 0x109   : > { %509 = vst.msk [vmem:[#allocation2 + $0x20] sm:$0xff] %vm497_vm0, %v494_v48  ;;  %511 = vst.msk [vmem:[#allocation2 + $0x40] sm:$0xff] %vm497_vm0, %v496_v49 }
 0x10a   : > { %v2235_v50 = vld [vmem:[%s3189_s1 + $0x78] sm:$0xff]   ;;  %v2237_v52 = vld [vmem:[%s3189_s1 + $0x70] sm:$0xff]   ;;  %v2239_v54 = vld [vmem:[%s3189_s1 + $0x68] sm:$0xff]  }
 0x10b   : > { %v2236_v51 = vld [vmem:[%s3189_s1 + $0x38] sm:$0xff]   ;;  %1979 = vmatprep.subr.bf16.mxu0 %v2235_v50  ;;  %v2238_v53 = vld [vmem:[%s3189_s1 + $0x30] sm:$0xff]   ;;  %v2240_v55 = vld [vmem:[%s3189_s1 + $0x28] sm:$0xff]  }
 0x10c   : > { %1980 = vmatpush3.bf16.msra.mxu0 %v2236_v51  ;;  %v2241_v56 = vld [vmem:[%s3189_s1 + $0x60] sm:$0xff]   ;;  %v2243_v58 = vld [vmem:[%s3189_s1 + $0x58] sm:$0xff]   ;;  %v2245_v60 = vld [vmem:[%s3189_s1 + $0x50] sm:$0xff]  }
 0x10d   : > { %1981 = vmatprep.subr.bf16.mxu0 %v2237_v52  ;;  %v2242_v57 = vld [vmem:[%s3189_s1 + $0x20] sm:$0xff]   ;;  %v2244_v59 = vld [vmem:[%s3189_s1 + $0x18] sm:$0xff]   ;;  %v521_v61 = vld [vmem:[%s519_s21 + $0x8] sm:$0xff] }
 0x10e   : > { %v523_v62 = vpack.c.bf16 %v521_v61, %v521_v61  ;;  %v2246_v63 = vld [vmem:[%s3189_s1 + $0x10] sm:$0xff]   ;;  %v2247_v0 = vld [vmem:[%s3189_s1 + $0x48] sm:$0xff]   ;;  %v2249_v2 = vld [vmem:[%s3189_s1 + $0x40] sm:$0xff]  }
 0x10f   : > { %v2248_v1 = vld [vmem:[%s3189_s1 + $0x8] sm:$0xff]   ;;  %v2250_v3 = vld [vmem:[%s3189_s1] sm:$0xff]  }
 0x110   : > { %1982 = vmatpush3.bf16.msra.mxu0 %v2238_v53  ;;  %691 = vmatprep.mubr.bf16.mxu0 %v523_v62  ;;  %v520_v4 = vld [vmem:[%s519_s21] sm:$0xff] }
 0x111   : > { %1983 = vmatprep.subr.bf16.mxu0 %v2239_v54  ;;  %v522_v5 = vpack.c.bf16 %v520_v4, %v520_v4  ;;  %v1848_v7 = vld [vmem:[%s3192_s4] ss:$0 sm:$0xff] }
 0x114   : > { %1984 = vmatpush3.bf16.msra.mxu0 %v2240_v55 }
 0x115   : > { %1985 = vmatprep.subr.bf16.mxu0 %v2241_v56 }
 0x118   : > { %1986 = vmatpush3.bf16.msra.mxu0 %v2242_v57 }
 0x119   : > { %1987 = vmatprep.subr.bf16.mxu0 %v2243_v58 }
 0x11c   : > { %1988 = vmatpush3.bf16.msra.mxu0 %v2244_v59 }
 0x11d   : > { %1989 = vmatprep.subr.bf16.mxu0 %v2245_v60 }
 0x120   : > { %1990 = vmatpush3.bf16.msra.mxu0 %v2246_v63 }
 0x121   : > { %1991 = vmatprep.subr.bf16.mxu0 %v2247_v0 }
 0x124   : > { %1992 = vmatpush3.bf16.msra.mxu0 %v2248_v1 }
 0x125   : > { %1993 = vmatprep.subr.bf16.mxu0 %v2249_v2 }
 0x128   : > { %1994 = vmatpush3.bf16.msra.mxu0 %v2250_v3 }
 0x12b   : > { %692 = vmatmul.mubr.bf16.vlgmr.msra.gmra.mxu0 %v522_v5 }
 0x1eb   : > { %v1995_v6 = vpop.f32.mrf.mxu0 }
 0x1ed   : > { %v1996_v8 = vpop.f32.mrf.mxu0 }
 0x1ee   : > { %v1997_v9 = vadd.f32 %v1996_v8, %v1995_v6 }
 0x1ef   : > { %v1998_v10 = vpop.f32.mrf.mxu0 }
 0x1f0   : > { %v694_v11 = vadd.f32 %v1997_v9, %v1848_v7 }
 0x1f1   : > { %v1999_v12 = vpop.f32.mrf.mxu0 }
 0x1f2   : > { %v699_v13 = vmax.f32 %v694_v11, 0.0 }
 0x1f4   : > { %700 = vst.msk [vmem:[#allocation2] sm:$0xff] %vm497_vm0, %v699_v13 }
 0x1f5 PF: > { %p1865_p0 = scmp.ge.s32.totalorder %s2391_s27, 1 }
 0x1f7   : > { %704 = sbr.rel (%p1865_p0) target bundleno = 743 (0x2e7), region = 56 }
 0x1fc   : > { %v2251_v14 = vld [vmem:[%s3189_s1 + $0x78] sm:$0xff]   ;;  %v2253_v16 = vld [vmem:[%s3189_s1 + $0x70] sm:$0xff]   ;;  %v2255_v18 = vld [vmem:[%s3189_s1 + $0x68] sm:$0xff]  }
 0x1fd   : > { %v2252_v15 = vld [vmem:[%s3189_s1 + $0x38] sm:$0xff]   ;;  %2001 = vmatprep.subr.bf16.mxu0 %v2251_v14  ;;  %v2254_v17 = vld [vmem:[%s3189_s1 + $0x30] sm:$0xff]   ;;  %v2256_v19 = vld [vmem:[%s3189_s1 + $0x28] sm:$0xff]  }
 0x1fe   : > { %2002 = vmatpush3.bf16.msra.mxu0 %v2252_v15  ;;  %v2257_v20 = vld [vmem:[%s3189_s1 + $0x60] sm:$0xff]   ;;  %v2259_v22 = vld [vmem:[%s3189_s1 + $0x58] sm:$0xff]   ;;  %v2261_v24 = vld [vmem:[%s3189_s1 + $0x50] sm:$0xff]  }
 0x1ff   : > { %2003 = vmatprep.subr.bf16.mxu0 %v2253_v16  ;;  %v2258_v21 = vld [vmem:[%s3189_s1 + $0x20] sm:$0xff]   ;;  %v2260_v23 = vld [vmem:[%s3189_s1 + $0x18] sm:$0xff]   ;;  %v1869_v25 = vld [vmem:[%s2568_s12 + $0x48] sm:$0xff] }
 0x200   : > { %v712_v26 = vpack.c.bf16 %v1869_v25, %v1869_v25  ;;  %v2262_v27 = vld [vmem:[%s3189_s1 + $0x10] sm:$0xff]   ;;  %v2263_v28 = vld [vmem:[%s3189_s1 + $0x48] sm:$0xff]   ;;  %v2265_v30 = vld [vmem:[%s3189_s1 + $0x40] sm:$0xff]  }
 0x201   : > { %v2264_v29 = vld [vmem:[%s3189_s1 + $0x8] sm:$0xff]   ;;  %v2266_v31 = vld [vmem:[%s3189_s1] sm:$0xff]  }
 0x202   : > { %2004 = vmatpush3.bf16.msra.mxu0 %v2254_v17  ;;  %880 = vmatprep.mubr.bf16.mxu0 %v712_v26  ;;  %v1868_v32 = vld [vmem:[%s2568_s12 + $0x40] sm:$0xff] }
 0x203   : > { %2005 = vmatprep.subr.bf16.mxu0 %v2255_v18  ;;  %v711_v33 = vpack.c.bf16 %v1868_v32, %v1868_v32  ;;  %v1870_v35 = vld [vmem:[%s3192_s4] ss:$0 sm:$0xff] }
 0x206   : > { %2006 = vmatpush3.bf16.msra.mxu0 %v2256_v19 }
 0x207   : > { %2007 = vmatprep.subr.bf16.mxu0 %v2257_v20 }
 0x20a   : > { %2008 = vmatpush3.bf16.msra.mxu0 %v2258_v21 }
 0x20b   : > { %2009 = vmatprep.subr.bf16.mxu0 %v2259_v22 }
 0x20e   : > { %2010 = vmatpush3.bf16.msra.mxu0 %v2260_v23 }
 0x20f   : > { %2011 = vmatprep.subr.bf16.mxu0 %v2261_v24 }
 0x212   : > { %2012 = vmatpush3.bf16.msra.mxu0 %v2262_v27 }
 0x213   : > { %2013 = vmatprep.subr.bf16.mxu0 %v2263_v28 }
 0x216   : > { %2014 = vmatpush3.bf16.msra.mxu0 %v2264_v29 }
 0x217   : > { %2015 = vmatprep.subr.bf16.mxu0 %v2265_v30 }
 0x21a   : > { %2016 = vmatpush3.bf16.msra.mxu0 %v2266_v31 }
 0x21d   : > { %881 = vmatmul.mubr.bf16.vlgmr.msra.gmra.mxu0 %v711_v33 }
 0x2dd   : > { %v2017_v34 = vpop.f32.mrf.mxu0 }
 0x2df   : > { %v2018_v36 = vpop.f32.mrf.mxu0 }
 0x2e0   : > { %v2019_v37 = vadd.f32 %v2018_v36, %v2017_v34 }
 0x2e1   : > { %v2020_v38 = vpop.f32.mrf.mxu0 }
 0x2e2   : > { %v883_v39 = vadd.f32 %v2019_v37, %v1870_v35 }
 0x2e3   : > { %v2021_v40 = vpop.f32.mrf.mxu0 }
 0x2e4   : > { %v888_v41 = vmax.f32 %v883_v39, 0.0 }
 0x2e6   : > { %889 = vst.msk [vmem:[#allocation2 + $0x50] sm:$0xff] %vm497_vm0, %v888_v41 }
 0x2e7 PF: > { %v2728_v42 = vld [vmem:[#allocation2 + $0x8] sm:$0xff]  ;;  %v2730_v43 = vld [vmem:[#allocation2 + $0x10] sm:$0xff]  ;;  %v893_v44 = vld [vmem:[#allocation2 + $0x18] sm:$0xff]  ;;  %v914_v45 = vlaneseq  ;;  %s2410_s9 = smov 64   ;;  %s1950_s23 = sshll.u32 %s2391_s27, 3 }
 0x2e8   : > { %v903_v46 = vrot.slane %v2728_v42, 7  ;;  %v904_v47 = vrot.slane %v2730_v43, 7  ;;  %v905_v48 = vrot.slane %v893_v44, 7  ;;  %v2734_v49 = vld [vmem:[#allocation2 + $0x20] sm:$0xff]  ;;  %v2736_v50 = vld [vmem:[#allocation2 + $0x28] sm:$0xff]  ;;  %v943_v55 = vrot.slane %v2730_v43, 1 }
 0x2e9   : > { %v2738_v51 = vshrl.u32 %v914_v45, 7  ;;  %v906_v52 = vrot.slane %v2734_v49, 7  ;;  %v907_v53 = vrot.slane %v2736_v50, 7  ;;  %v2742_v54 = vld [vmem:[#allocation2] sm:$0xff]  ;;  %v2745_v56 = vld [vmem:[#allocation2 + $0x30] sm:$0xff]  ;;  %v2747_v57 = vld [vmem:[#allocation2 + $0x38] sm:$0xff]  ;;  %v2775_v5 = vpack.c.bf16 %v893_v44, %v2730_v43 }
 0x2ea   : > { %v944_v58 = vrot.slane %v893_v44, 1  ;;  %v945_v59 = vrot.slane %v2734_v49, 1  ;;  %v2267_v0 = vld [vmem:[%s3190_s2 + $0x78] sm:$0xff]   ;;  %v935_v4 = vpack.c.bf16 %v2728_v42, %v2742_v54  ;;  %v2269_v6 = vld [vmem:[%s3190_s2 + $0x70] sm:$0xff]   ;;  %v908_v9 = vrot.slane %v2745_v56, 7  ;;  %v2792_v11 = vld [vmem:[#allocation2 + $0x40] sm:$0xff] }
 0x2eb   : > { %vm916_vm1 = vcmp.lt.s32.totalorder %v2738_v51, 1  ;;  %vm953_vm2 = vcmp.lt.s32.totalorder %v2738_v51, 7  ;;  %v2268_v3 = vld [vmem:[%s3190_s2 + $0x38] sm:$0xff]   ;;  %2023 = vmatprep.subr.bf16.mxu0 %v2267_v0  ;;  %v909_v10 = vrot.slane %v2747_v57, 7  ;;  %v2794_v12 = vld [vmem:[#allocation2 + $0x48] sm:$0xff]  ;;  %v946_v13 = vrot.slane %v2736_v50, 1 }
 0x2ec   : > { %v925_v60 = vsel %vm916_vm1, %v904_v47, %v905_v48  ;;  %v926_v61 = vsel %vm916_vm1, %v903_v46, %v904_v47  ;;  %v923_v62 = vsel %vm916_vm1, %v906_v52, %v907_v53  ;;  %v924_v63 = vsel %vm916_vm1, %v905_v48, %v906_v52  ;;  %2024 = vmatpush3.bf16.msra.mxu0 %v2268_v3  ;;  %v2270_v14 = vld [vmem:[%s3190_s2 + $0x30] sm:$0xff]   ;;  %v2271_v15 = vld [vmem:[%s3190_s2 + $0xf8] sm:$0xff]   ;;  %v2273_v24 = vld [vmem:[%s3190_s2 + $0x68] sm:$0xff]   ;;  %s1941_s0 = sshll.u32 %s2395_s28, 4  ;;  %s1732_s28 = sshll.u32 %s2615_s16, 4  ;;  %s3131_s28 = int_to_ptr.vmem [resolvable:$true] %s1732_s28 }
 0x2ed   : > { %v2765_v1 = vpack.c.bf16 %v925_v60, %v926_v61  ;;  %v2767_v2 = vpack.c.bf16 %v923_v62, %v924_v63  ;;  %v961_v7 = vsel %vm953_vm2, %v944_v58, %v945_v59  ;;  %v962_v8 = vsel %vm953_vm2, %v943_v55, %v944_v58  ;;  %2025 = vmatprep.subr.bf16.mxu0 %v2269_v6  ;;  %v2272_v19 = vld [vmem:[%s3190_s2 + $0xb8] sm:$0xff]   ;;  %v2274_v27 = vld [vmem:[%s3190_s2 + $0x28] sm:$0xff]   ;;  %v2275_v28 = vld [vmem:[%s3190_s2 + $0xf0] sm:$0xff]   ;;  %s1729_s21 = sadd.s32 %s1950_s23, %s1941_s0  ;;  %s2315_s17 = scalar_lea.vmem %s3131_s28, 1024 }
 0x2ee   : > { %v2805_v16 = vpack.c.bf16 %v2736_v50, %v2734_v49  ;;  %v2807_v17 = vpack.c.bf16 %v961_v7, %v962_v8  ;;  %v947_v18 = vrot.slane %v2745_v56, 1  ;;  %2063 = vmatprep.subr.bf16.mxu1 %v2271_v15  ;;  %v921_v20 = vsel %vm916_vm1, %v908_v9, %v909_v10  ;;  %v2826_v26 = vld [vmem:[#allocation2 + $0x58] sm:$0xff]  ;;  %v2276_v33 = vld [vmem:[%s3190_s2 + $0xb0] sm:$0xff]   ;;  %v2277_v38 = vld [vmem:[%s3190_s2 + $0x60] sm:$0xff]   ;;  %s1942_s27 = sshll.u32 %s1729_s21, 7  ;;  %p2316_p1 = scmp.ne.s32.totalorder %s3131_s28, %s2315_s17 }
 0x2ef   : > { %988 = vrot.lane.b32.xlu0 %v2765_v1, %s2410_s9  ;;  %990 = vrot.lane.b32.xlu1 %v2767_v2, %s2410_s9  ;;  %v922_v21 = vsel %vm916_vm1, %v907_v53, %v908_v9  ;;  %v910_v22 = vrot.slane %v2792_v11, 7  ;;  %v911_v23 = vrot.slane %v2794_v12, 7  ;;  %v948_v25 = vrot.slane %v2747_v57, 1  ;;  %v2855_v37 = vld [vmem:[#allocation2 + $0x50] sm:$0xff]  ;;  %v2278_v45 = vld [vmem:[%s3190_s2 + $0x20] sm:$0xff]   ;;  %v2279_v49 = vld [vmem:[%s3190_s2 + $0xe8] sm:$0xff]   ;;  %s3129_s11 = scalar_lea.hbm %s3195_s7, %s1942_s27 }
 0x2f0   : > { %2026 = vmatpush3.bf16.msra.mxu0 %v2270_v14  ;;  %2064 = vmatpush3.bf16.msra.mxu1 %v2272_v19  ;;  %v941_v29 = vrot.slane %v2742_v54, 1  ;;  %v2835_v30 = vpack.c.bf16 %v921_v20, %v922_v21  ;;  %v2839_v31 = vpack.c.bf16 %v2747_v57, %v2745_v56  ;;  %v959_v32 = vsel %vm953_vm2, %v946_v13, %v947_v18  ;;  %v2280_v53 = vld [vmem:[%s3190_s2 + $0xa8] sm:$0xff]   ;;  %v2281_v60 = vld [vmem:[%s3190_s2 + $0x58] sm:$0xff]   ;;  %v2283_v0 = vld [vmem:[%s3190_s2 + $0xe0] sm:$0xff]   ;;  %p2317_p2 = pnand %p2316_p1, %p2506_p3  ;;  %s2412_s13 = smov [#allocation3]  }
 0x2f1   : > { %2027 = vmatprep.subr.bf16.mxu0 %v2273_v24  ;;  %v942_v34 = vrot.slane %v2728_v42, 1  ;;  %v960_v35 = vsel %vm953_vm2, %v945_v59, %v946_v13  ;;  %v920_v36 = vsel %vm916_vm1, %v909_v10, %v910_v22  ;;  %v913_v39 = vrot.slane %v2826_v26, 7  ;;  %2065 = vmatprep.subr.bf16.mxu1 %v2275_v28  ;;  %v2282_v61 = vld [vmem:[%s3190_s2 + $0x18] sm:$0xff]   ;;  %v2285_v10 = vld [vmem:[%s3190_s2 + $0x50] sm:$0xff]   ;;  %v2289_v20 = vld [vmem:[%s3190_s2 + $0x48] sm:$0xff]   ;;  %s2319_s20 = sshll.u32 %s2412_s13, 4  ;;  %s2320_s20 = int_to_ptr.vmem [resolvable:$false] %s2319_s20 }
 0x2f2   : > { %v902_v40 = vrot.slane %v2742_v54, 7  ;;  %v919_v41 = vsel %vm916_vm1, %v910_v22, %v911_v23  ;;  %v949_v44 = vrot.slane %v2792_v11, 1  ;;  %v2904_v42 = vpack.c.bf16 %v959_v32, %v960_v35  ;;  %v2287_v13 = vld [vmem:[%s3190_s2 + $0xd8] sm:$0xff]   ;;  %v2290_v21 = vld [vmem:[%s3190_s2 + $0x8] sm:$0xff]   ;;  %v2291_v22 = vld [vmem:[%s3190_s2 + $0xd0] sm:$0xff]   ;;  %p2318_p4 = pneg %p2317_p2  ;;  %p2322_p5 = scmp.lt.s32.totalorder %s3131_s28, %s2320_s20 }
 0x2f3   : > { %976 = vrot.lane.b32.xlu0 %v935_v4, %s2410_s9  ;;  %978 = vrot.lane.b32.xlu1 %v2775_v5, %s2410_s9  ;;  %v2872_v47 = vsel %vm953_vm2, %v942_v34, %v943_v55  ;;  %v2878_v48 = vsel %vm953_vm2, %v941_v29, %v942_v34  ;;  %v951_v56 = vrot.slane %v2855_v37, 1  ;;  %v958_v58 = vsel %vm953_vm2, %v947_v18, %v948_v25  ;;  %v2284_v4 = vld [vmem:[%s3190_s2 + $0xa0] sm:$0xff]   ;;  %v2288_v18 = vld [vmem:[%s3190_s2 + $0x98] sm:$0xff]  }
 0x2f4   : > { %2028 = vmatpush3.bf16.msra.mxu0 %v2274_v27  ;;  %2066 = vmatpush3.bf16.msra.mxu1 %v2276_v33  ;;  %v966_v50 = vpack.c.bf16 %v2872_v47, %v2878_v48  ;;  %v2889_v43 = vsel %vm916_vm1, %v902_v40, %v903_v46  ;;  %v2893_v52 = vsel %vm916_vm1, %v913_v39, %v902_v40  ;;  %v950_v59 = vrot.slane %v2794_v12, 1  ;;  %v2294_v28 = vld [vmem:[%s3190_s2] sm:$0xff]   ;;  %v2295_v54 = vld [vmem:[%s3190_s2 + $0xc8] sm:$0xff]   ;;  %v2297_v32 = vld [vmem:[%s3190_s2 + $0x118] sm:$0xff]  }
 0x2f5   : > { %2029 = vmatprep.subr.bf16.mxu0 %v2277_v38  ;;  %v929_v55 = vpack.c.bf16 %v2889_v43, %v2893_v52  ;;  %v2906_v46 = vpack.c.bf16 %v919_v41, %v920_v36  ;;  %v957_v57 = vsel %vm953_vm2, %v948_v25, %v949_v44  ;;  %2067 = vmatprep.subr.bf16.mxu1 %v2279_v49  ;;  %v912_v62 = vrot.slane %v2855_v37, 7  ;;  %v2298_v33 = vld [vmem:[%s3190_s2 + $0xc0] sm:$0xff]   ;;  %v2300_v41 = vld [vmem:[%s3190_s2 + $0x110] sm:$0xff]  }
 0x2f6   : > { %v2923_v63 = vpack.c.bf16 %v2794_v12, %v2792_v11  ;;  %v2932_v3 = vpack.c.bf16 %v957_v57, %v958_v58  ;;  %v955_v8 = vsel %vm953_vm2, %v950_v59, %v951_v56  ;;  %v956_v9 = vsel %vm953_vm2, %v949_v44, %v950_v59  ;;  %v2286_v12 = vld [vmem:[%s3190_s2 + $0x10] sm:$0xff]   ;;  %v2299_v34 = vld [vmem:[%s3190_s2 + $0x80] sm:$0xff]  }
 0x2f7   : > { %980 = vrot.lane.b32.xlu0 %v2805_v16, %s2410_s9  ;;  %1000 = vrot.lane.b32.xlu1 %v2807_v17, %s2410_s9  ;;  %v2939_v6 = vsel %vm916_vm1, %v912_v62, %v913_v39  ;;  %v2943_v7 = vsel %vm916_vm1, %v911_v23, %v912_v62  ;;  %v940_v14 = vpack.c.bf16 %v2826_v26, %v2855_v37  ;;  %v952_v19 = vrot.slane %v2826_v26, 1  ;;  %v2292_v23 = vld [vmem:[%s3190_s2 + $0x90] sm:$0xff]   ;;  %v2293_v26 = vld [vmem:[%s3190_s2 + $0x40] sm:$0xff]  }
 0x2f8   : > { %2030 = vmatpush3.bf16.msra.mxu0 %v2278_v45  ;;  %2068 = vmatpush3.bf16.msra.mxu1 %v2280_v53  ;;  %v934_v11 = vpack.c.bf16 %v2939_v6, %v2943_v7  ;;  %v2966_v15 = vpack.c.bf16 %v955_v8, %v956_v9  ;;  %v2302_v53 = vld [vmem:[%s3190_s2 + $0x100] sm:$0xff]   ;;  %v2411_v8 = vmov 0  }
 0x2f9   : > { %2031 = vmatprep.subr.bf16.mxu0 %v2281_v60  ;;  %2069 = vmatprep.subr.bf16.mxu1 %v2283_v0  ;;  %v2989_v24 = vsel %vm953_vm2, %v951_v56, %v952_v19  ;;  %v2995_v25 = vsel %vm953_vm2, %v952_v19, %v941_v29  ;;  %v2296_v29 = vld [vmem:[%s3190_s2 + $0x88] sm:$0xff]  }
 0x2fa   : > { %v971_v27 = vpack.c.bf16 %v2995_v25, %v2989_v24  ;;  %v2308_v0 = vld [vmem:[%s3191_s3 + $0x24] ss:$8 sps:$4 sm:$0xff]   ;;  %v2312_v6 = vld [vmem:[%s3191_s3] ss:$8 sps:$4 sm:$0xff]  }
 0x2fb   : > { %992 = vrot.lane.b32.xlu0 %v2835_v30, %s2410_s9  ;;  %982 = vrot.lane.b32.xlu1 %v2839_v31, %s2410_s9  ;;  %v2314_v7 = vld [vmem:[%s3191_s3 + $0x4] ss:$8 sps:$4 sm:$0xff]  }
 0x2fc   : > { %2032 = vmatpush3.bf16.msra.mxu0 %v2282_v61  ;;  %2070 = vmatpush3.bf16.msra.mxu1 %v2284_v4  ;;  %v2311_v4 = vld [vmem:[%s3191_s3 + $0x14] ss:$8 sps:$4 sm:$0xff]  }
 0x2fd   : > { %2033 = vmatprep.subr.bf16.mxu0 %v2285_v10  ;;  %2071 = vmatprep.subr.bf16.mxu1 %v2287_v13 }
 0x2ff   : > { %1002 = vrot.lane.b32.xlu0 %v2904_v42, %s2410_s9  ;;  %994 = vrot.lane.b32.xlu1 %v2906_v46, %s2410_s9 }
 0x300   : > { %2034 = vmatpush3.bf16.msra.mxu0 %v2286_v12  ;;  %2072 = vmatpush3.bf16.msra.mxu1 %v2288_v18 }
 0x301   : > { %2035 = vmatprep.subr.bf16.mxu0 %v2289_v20  ;;  %2073 = vmatprep.subr.bf16.mxu1 %v2291_v22 }
 0x303   : > { %1010 = vrot.lane.b32.xlu0 %v2923_v63, %s2410_s9  ;;  %1004 = vrot.lane.b32.xlu1 %v2932_v3, %s2410_s9 }
 0x304   : > { %2036 = vmatpush3.bf16.msra.mxu0 %v2290_v21  ;;  %2074 = vmatpush3.bf16.msra.mxu1 %v2292_v23 }
 0x305   : > { %2037 = vmatprep.subr.bf16.mxu0 %v2293_v26  ;;  %2075 = vmatprep.subr.bf16.mxu1 %v2295_v54 }
 0x307   : > { %1012 = vrot.lane.b32.xlu0 %v940_v14, %s2410_s9  ;;  %1006 = vrot.lane.b32.xlu1 %v2966_v15, %s2410_s9  ;;  %s2321_s9 = scalar_lea.vmem %s2320_s20, 2048 }
 0x308   : > { %2038 = vmatpush3.bf16.msra.mxu0 %v2294_v28  ;;  %2076 = vmatpush3.bf16.msra.mxu1 %v2296_v29  ;;  %p2323_p6 = scmp.lt.s32.totalorder %s2321_s9, %s2315_s17 }
 0x309   : > { %2111 = vmatprep.subr.bf16.mxu0 %v2297_v32  ;;  %2077 = vmatprep.subr.bf16.mxu1 %v2298_v33 }
 0x30a   : > { %p2324_p7 = por %p2323_p6, %p2322_p5 }
 0x30c   : > { %2078 = vmatpush3.bf16.msra.mxu1 %v2299_v34  ;;  %p2325_p9 = pnand %p2324_p7, %p2318_p4 }
 0x361   : > { %v989_v35 = vpop.permute.xlu0 %988  ;;  %v991_v36 = vpop.permute.xlu1 %990 }
 0x362   : > { %v1032_v37 = vsel %vm497_vm0, %v966_v50, %v989_v35  ;;  %v1036_v38 = vsel %vm497_vm0, %v2807_v17, %v991_v36  ;;  %v2301_v17 = vld [vmem:[%s3190_s2 + $0x108] sm:$0xff]  }
 0x363   : > { %1407 = vmatprep.mubr.bf16.mxu0 %v1032_v37 }
 0x365   : > { %v977_v39 = vpop.permute.xlu0 %976  ;;  %v979_v40 = vpop.permute.xlu1 %978 }
 0x366   : > { %v1016_v44 = vsel %vm497_vm0, %v929_v55, %v977_v39  ;;  %v1020_v50 = vsel %vm497_vm0, %v2765_v1, %v979_v40 }
 0x367   : > { %1408 = vmatmul.mubr.bf16.vlgmr.msra.gmra.mxu0 %v1016_v44 }
 0x368   : > { %2112 = vmatpush3.bf16.msra.mxu0 %v2297_v32  ;;  %1414 = vmatprep.mubr.bf16.mxu0 %v1036_v38 }
 0x369   : > { %v981_v45 = vpop.permute.xlu0 %980  ;;  %v1001_v47 = vpop.permute.xlu1 %1000  ;;  %2113 = vmatprep.subr.bf16.mxu0 %v2300_v41 }
 0x36a   : > { %v1048_v48 = vsel %vm497_vm0, %v2775_v5, %v1001_v47  ;;  %v1024_v49 = vsel %vm497_vm0, %v2767_v2, %v981_v45 }
 0x36b   : > { %1468 = vmatprep.mubr.bf16.mxu1 %v1024_v49 }
 0x36c   : > { %1469 = vmatmul.mubr.bf16.vlgmr.msra.gmra.mxu1 %v1048_v48  ;;  %2114 = vmatpush3.bf16.msra.mxu0 %v2300_v41  ;;  %v1887_v41 = vld [vmem:[%s3193_s5] ss:$0 sm:$0xff] }
 0x36d   : > { %v993_v43 = vpop.permute.xlu0 %992  ;;  %v983_v52 = vpop.permute.xlu1 %982  ;;  %2115 = vmatprep.subr.bf16.mxu0 %v2301_v17 }
 0x36e   : > { %v1040_v55 = vsel %vm497_vm0, %v2904_v42, %v993_v43  ;;  %v1028_v5 = vsel %vm497_vm0, %v2835_v30, %v983_v52 }
 0x36f   : > { %1415 = vmatmul.mubr.bf16.gmra.mxu0 %v1020_v50  ;;  %1475 = vmatprep.mubr.bf16.mxu1 %v1028_v5 }
 0x370   : > { %1421 = vmatprep.mubr.bf16.mxu0 %v1040_v55  ;;  %2116 = vmatpush3.bf16.msra.mxu0 %v2301_v17 }
 0x371   : > { %v1003_v1 = vpop.permute.xlu0 %1002  ;;  %v995_v2 = vpop.permute.xlu1 %994  ;;  %2117 = vmatprep.subr.bf16.mxu0 %v2302_v53 }
 0x372   : > { %v1052_v56 = vsel %vm497_vm0, %v2805_v16, %v1003_v1  ;;  %v1044_v57 = vsel %vm497_vm0, %v2932_v3, %v995_v2 }
 0x374   : > { %1476 = vmatmul.mubr.bf16.gmra.mxu1 %v1052_v56  ;;  %2118 = vmatpush3.bf16.msra.mxu0 %v2302_v53 }
 0x375   : > { %v1011_v58 = vpop.permute.xlu0 %1010  ;;  %v1005_v30 = vpop.permute.xlu1 %1004 }
 0x376   : > { %v1064_v59 = vsel %vm497_vm0, %v2906_v46, %v1011_v58  ;;  %v1056_v60 = vsel %vm497_vm0, %v2839_v31, %v1005_v30  ;;  %v2303_v31 = vld [vmem:[%s3191_s3 + $0x30] ss:$8 sps:$4 sm:$0xff]  }
 0x377   : > { %1422 = vmatmul.mubr.bf16.gmra.mxu0 %v1024_v49  ;;  %1482 = vmatprep.mubr.bf16.mxu1 %v1064_v59 }
 0x378   : > { %1428 = vmatprep.mubr.bf16.mxu0 %v1044_v57 }
 0x379   : > { %v1013_v61 = vpop.permute.xlu0 %1012  ;;  %v1007_v62 = vpop.permute.xlu1 %1006 }
 0x37a   : > { %v1068_v16 = vsel %vm497_vm0, %v934_v11, %v1013_v61  ;;  %v1060_v46 = vsel %vm497_vm0, %v2923_v63, %v1007_v62  ;;  %v2306_v63 = vld [vmem:[%s3191_s3 + $0x20] ss:$8 sps:$4 sm:$0xff]  }
 0x37c   : > { %1483 = vmatmul.mubr.bf16.gmra.mxu1 %v1056_v60 }
 0x37d   : > { %1489 = vmatprep.mubr.bf16.mxu1 %v1068_v16 }
 0x37f   : > { %1429 = vmatmul.mubr.bf16.gmra.mxu0 %v1028_v5 }
 0x380   : > { %2119 = vmatprep.mubr.msk.bf16.mxu0 %vm497_vm0, %v2904_v42  ;;  %v2305_v42 = vld [vmem:[%s3191_s3 + $0x34] ss:$8 sps:$4 sm:$0xff]  }
 0x381   : > { %1638 = vmatprep.subr.bf16.mxu1 %v2305_v42 }
 0x382   : > { %1639 = vmatpush1.bf16.msra.mxu1 %v2303_v31 }
 0x383   : > { %1640 = vmatprep.subr.bf16.mxu1 %v2308_v0 }
 0x384   : > { %1490 = vmatmul.mubr.bf16.gmra.mxu1 %v1060_v46 }
 0x385   : > { %1662 = vmatprep.mubr.bf16.mxu1 %v2411_v8 }
 0x386   : > { %1641 = vmatpush1.bf16.msra.mxu1 %v2306_v63 }
 0x387   : > { %2120 = vmatmul.mubr.msk.bf16.vlgmr.msra.gmra.mxu0 %vm497_vm0, %v2932_v3  ;;  %v2309_v3 = vld [vmem:[%s3191_s3 + $0x10] ss:$8 sps:$4 sm:$0xff]   ;;  %1642 = vmatprep.subr.bf16.mxu1 %v2311_v4 }
 0x388   : > { %2123 = vmatprep.mubr.msk.bf16.mxu0 %vm497_vm0, %v2966_v15 }
 0x38a   : > { %1643 = vmatpush1.bf16.msra.mxu1 %v2309_v3 }
 0x38b   : > { %1644 = vmatprep.subr.bf16.mxu1 %v2314_v7 }
 0x38e   : > { %1645 = vmatpush1.bf16.msra.mxu1 %v2312_v6 }
 0x38f   : > { %2124 = vmatmul.mubr.msk.bf16.gmra.mxu0 %vm497_vm0, %v971_v27 }
 0x427   : > { %v2039_v9 = vpop.f32.mrf.mxu0 }
 0x429   : > { %v2040_v10 = vpop.f32.mrf.mxu0 }
 0x42a   : > { %v2041_v38 = vadd.f32 %v2040_v10, %v2039_v9 }
 0x42b   : > { %v2042_v11 = vpop.f32.mrf.mxu0 }
 0x42c   : > { %v2079_v12 = vpop.f32.mrf.mxu1  ;;  %v1410_v49 = vadd.f32 %v2041_v38, %v1887_v41  ;;  %v1687_v38 = vld [vmem:[%s2568_s12 + $0x20] sm:$0xff] }
 0x42d   : > { %v2043_v13 = vpop.f32.mrf.mxu0 }
 0x42e   : > { %v2080_v14 = vpop.f32.mrf.mxu1 }
 0x42f   : > { %v2045_v15 = vpop.f32.mrf.mxu0  ;;  %v2081_v45 = vadd.f32 %v2080_v14, %v2079_v12  ;;  %v1576_v14 = vsub.s32 0, %v2738_v51 }
 0x430   : > { %v2082_v18 = vpop.f32.mrf.mxu1 }
 0x431   : > { %v2046_v19 = vpop.f32.mrf.mxu0  ;;  %v1471_v1 = vadd.f32 %v2081_v45, %v1410_v49  ;;  %v1580_v18 = vsub.s32 1, %v2738_v51  ;;  %v1688_v45 = vld [vmem:[%s2568_s12 + $0x28] sm:$0xff] }
 0x432   : > { %v2083_v20 = vpop.f32.mrf.mxu1  ;;  %v2047_v35 = vadd.f32 %v2046_v19, %v2045_v15  ;;  %v1572_v15 = vld [vmem:[%s3194_s6] sm:$0x3] }
 0x433   : > { %v2048_v21 = vpop.f32.mrf.mxu0  ;;  %v1581_v19 = vrot.slane %v1572_v15, %v1580_v18 }
 0x434   : > { %v2085_v22 = vpop.f32.mrf.mxu1  ;;  %v1417_v47 = vadd.f32 %v2047_v35, %v1887_v41  ;;  %v1683_v21 = vld [vmem:[%s2568_s12] sm:$0xff] }
 0x435   : > { %v2049_v23 = vpop.f32.mrf.mxu0 }
 0x436   : > { %v2086_v24 = vpop.f32.mrf.mxu1 }
 0x437   : > { %v2051_v25 = vpop.f32.mrf.mxu0  ;;  %v2087_v39 = vadd.f32 %v2086_v24, %v2085_v22  ;;  %v1684_v24 = vld [vmem:[%s2568_s12 + $0x8] sm:$0xff] }
 0x438   : > { %v2088_v26 = vpop.f32.mrf.mxu1 }
 0x439   : > { %v2052_v27 = vpop.f32.mrf.mxu0  ;;  %v1478_v43 = vadd.f32 %v2087_v39, %v1417_v47 }
 0x43a   : > { %v2089_v28 = vpop.f32.mrf.mxu1  ;;  %v2053_v56 = vadd.f32 %v2052_v27, %v2051_v25 }
 0x43b   : > { %v2054_v54 = vpop.f32.mrf.mxu0  ;;  %v1685_v28 = vld [vmem:[%s2568_s12 + $0x10] sm:$0xff] }
 0x43c   : > { %v2091_v29 = vpop.f32.mrf.mxu1  ;;  %v1424_v31 = vadd.f32 %v2053_v56, %v1887_v41 }
 0x43d   : > { %v2055_v32 = vpop.f32.mrf.mxu0 }
 0x43e   : > { %v2092_v33 = vpop.f32.mrf.mxu1 }
 0x43f   : > { %v2057_v34 = vpop.f32.mrf.mxu0  ;;  %v2093_v60 = vadd.f32 %v2092_v33, %v2091_v29  ;;  %v1686_v33 = vld [vmem:[%s2568_s12 + $0x18] sm:$0xff] }
 0x440   : > { %v2094_v36 = vpop.f32.mrf.mxu1 }
 0x441   : > { %v2058_v37 = vpop.f32.mrf.mxu0  ;;  %v1485_v4 = vadd.f32 %v2093_v60, %v1424_v31 }
 0x442   : > { %v2095_v40 = vpop.f32.mrf.mxu1  ;;  %v2059_v53 = vadd.f32 %v2058_v37, %v2057_v34 }
 0x443   : > { %v2060_v44 = vpop.f32.mrf.mxu0 }
 0x444   : > { %v2097_v17 = vpop.f32.mrf.mxu1  ;;  %v1431_v61 = vadd.f32 %v2059_v53, %v1887_v41 }
 0x445   : > { %v2061_v48 = vpop.f32.mrf.mxu0 }
 0x446   : > { %v2098_v50 = vpop.f32.mrf.mxu1 }
 0x447   : > { %v2121_v52 = vpop.f32.mrf.mxu0  ;;  %v2099_v57 = vadd.f32 %v2098_v50, %v2097_v17  ;;  %v1689_v50 = vld [vmem:[%s2568_s12 + $0x30] sm:$0xff] }
 0x448   : > { %v1539_v55 = vadd.f32 %v2121_v52, %v1478_v43  ;;  %v2100_v5 = vpop.f32.mrf.mxu1 }
 0x449   : > { %v1531_v2 = vpop.f32.mrf.mxu0  ;;  %v1492_v63 = vadd.f32 %v2099_v57, %v1431_v61  ;;  %v1690_v5 = vld [vmem:[%s2568_s12 + $0x38] sm:$0xff]  ;;  %s3208_s12 = sand.u32 1, %s2383_s25  }
 0x44a   : > { %v1532_v58 = vadd.f32 %v1531_v2, %v1471_v1  ;;  %v2101_v59 = vpop.f32.mrf.mxu1  ;;  %v1559_v16 = vmax.f32 %v1539_v55, 0.0  ;;  %s3137_s10 = scalar_lea.sflag [#allocation4], %s3208_s12 }
 0x44b   : > { %v2122_v30 = vpop.f32.mrf.mxu0 }
 0x44c   : > { %v1558_v62 = vmax.f32 %v1532_v58, 0.0 }
 0x44d   : > { %v1534_v46 = vpop.f32.mrf.mxu0 }
 0x44e   : > { %v1562_v42 = vpack.c.bf16 %v1559_v16, %v1558_v62 }
 0x44f   : > { %v2125_v0 = vpop.f32.mrf.mxu0 }
 0x450   : > { %v1553_v3 = vadd.f32 %v2125_v0, %v1492_v63  ;;  %1936 = vmatmul.mubr.msk.bf16.vlgmr.msra.gmra.mxu1 %vm497_vm0, %v1562_v42 }
 0x451   : > { %v1545_v6 = vpop.f32.mrf.mxu0  ;;  %1672 = vmatprep.mubr.bf16.mxu1 %v2411_v8  ;;  %v1577_v8 = vrot.slane %v1572_v15, %v1576_v14 }
 0x452   : > { %v1546_v7 = vadd.f32 %v1545_v6, %v1485_v4  ;;  %v1561_v10 = vmax.f32 %v1553_v3, 0.0 }
 0x453   : > { %v2126_v9 = vpop.f32.mrf.mxu0 }
 0x454   : > { %v1560_v11 = vmax.f32 %v1546_v7, 0.0 }
 0x455   : > { %v1548_v12 = vpop.f32.mrf.mxu0 }
 0x456   : > { %v1563_v13 = vpack.c.bf16 %v1561_v10, %v1560_v11 }
 0x458   : > { %1937 = vmatmul.mubr.msk.bf16.gmra.mxu1 %vm497_vm0, %v1563_v13 }
 0x510   : > { %v1664_v20 = vpop.f32.mrf.mxu1 }
 0x511   : > { %v1665_v22 = vadd.f32 %v1664_v20, %v1577_v8 }
 0x512   : > { %v1666_v23 = vpop.f32.mrf.mxu1 }
 0x513   : > { %v1691_v25 = vadd.f32 %v1683_v21, %v1665_v22  ;;  %v1667_v26 = vadd.f32 %v1666_v23, %v1581_v19 }
 0x514   : > { %v1668_v27 = vpop.f32.mrf.mxu1 }
 0x515   : > { %v1699_v54 = vmax.f32 %v1691_v25, 0.0  ;;  %v1692_v29 = vadd.f32 %v1684_v24, %v1667_v26  ;;  %v1669_v51 = vadd.f32 %v1668_v27, %v1577_v8 }
 0x516   : > { %v1670_v32 = vpop.f32.mrf.mxu1 }
 0x517   : > { %1707 = vst [vmem:[%s2615_s16] sm:$0xff] %v1699_v54  ;;  %v1700_v34 = vmax.f32 %v1692_v29, 0.0  ;;  %v1693_v35 = vadd.f32 %v1685_v28, %v1669_v51  ;;  %v1671_v36 = vadd.f32 %v1670_v32, %v1581_v19 }
 0x518   : > { %v1674_v37 = vpop.f32.mrf.mxu1 }
 0x519   : > { %1708 = vst [vmem:[%s2615_s16 + $0x8] sm:$0xff] %v1700_v34  ;;  %v1701_v39 = vmax.f32 %v1693_v35, 0.0  ;;  %v1694_v40 = vadd.f32 %v1686_v33, %v1671_v36  ;;  %v1675_v41 = vadd.f32 %v1674_v37, %v1577_v8 }
 0x51a   : > { %v1676_v44 = vpop.f32.mrf.mxu1 }
 0x51b   : > { %1709 = vst [vmem:[%s2615_s16 + $0x10] sm:$0xff] %v1701_v39  ;;  %v1702_v47 = vmax.f32 %v1694_v40, 0.0  ;;  %v1695_v17 = vadd.f32 %v1687_v38, %v1675_v41  ;;  %v1677_v48 = vadd.f32 %v1676_v44, %v1581_v19 }
 0x51c   : > { %v1678_v49 = vpop.f32.mrf.mxu1 }
 0x51d   : > { %1710 = vst [vmem:[%s2615_s16 + $0x18] sm:$0xff] %v1702_v47  ;;  %v1703_v43 = vmax.f32 %v1695_v17, 0.0  ;;  %v1696_v52 = vadd.f32 %v1688_v45, %v1677_v48  ;;  %v1679_v53 = vadd.f32 %v1678_v49, %v1577_v8 }
 0x51e   : > { %v1680_v55 = vpop.f32.mrf.mxu1 }
 0x51f   : > { %1711 = vst [vmem:[%s2615_s16 + $0x20] sm:$0xff] %v1703_v43  ;;  %v1704_v1 = vmax.f32 %v1696_v52, 0.0  ;;  %v1697_v2 = vadd.f32 %v1689_v50, %v1679_v53  ;;  %v1681_v56 = vadd.f32 %v1680_v55, %v1581_v19 }
 0x521   : > { %1712 = vst [vmem:[%s2615_s16 + $0x28] sm:$0xff] %v1704_v1  ;;  %v1705_v57 = vmax.f32 %v1697_v2, 0.0  ;;  %v1698_v58 = vadd.f32 %v1690_v5, %v1681_v56 }
 0x523   : > { %1713 = vst [vmem:[%s2615_s16 + $0x30] sm:$0xff] %v1705_v57  ;;  %v1706_v59 = vmax.f32 %v1698_v58, 0.0 }
 0x525   : > { %1714 = vst [vmem:[%s2615_s16 + $0x38] sm:$0xff] %v1706_v59 }
 0x526   : > { %2328 = shalt.err (!%p2325_p9)
}
 0x527   : > { %s2329_s16 = scalar_lea.hbm %s3129_s11, 1024  ;;  %s2333_s0 = scalar_lea.hbm %s3195_s7, 4096 }
 0x528   : > { %p2330_p10 = scmp.ne.s32.totalorder %s3129_s11, %s2329_s16  ;;  %p2334_p13 = scmp.lt.s32.totalorder %s3129_s11, %s3195_s7 }
 0x529   : > { %p2335_p0 = scmp.lt.s32.totalorder %s2333_s0, %s2329_s16 }
 0x52a   : > { %p2331_p11 = pnand %p2330_p10, %p2506_p3 }
 0x52b   : > { %p2336_p1 = por %p2335_p0, %p2334_p13 }
 0x52c   : > { %p2332_p12 = pneg %p2331_p11 }
 0x52e   : > { %p2337_p2 = pnand %p2336_p1, %p2332_p12 }
 0x530   : > { %2340 = shalt.err (!%p2337_p2)
}
 0x531   : > { %s2413_s22 = smov 256   ;;  %s2414_s30 = smov 16  }
 0x532   : > { %2143 = dma.vmem_to_hbm [thread:$0]  (%p2506_p3), %s3131_s28, 1024, %s3129_s11, %s3137_s10, %s2413_s22, %s2413_s22, %s2414_s30  }
 0x533 PF: > { %p2149_p4 = scmp.ge.s32.totalorder %s2407_s8, 2  ;;  %s1747_s12 = sand.u32 1, %s2379_s24  }
 0x534   : > { %s1748_s17 = scalar_lea.sflag [#allocation4], %s1747_s12 }
 0x535   : > { %p2146_p5 = pnand %p2149_p4, %p2515_p8 }
 0x537   : > { %p2147_p6 = pneg %p2146_p5 }
 0x539   : > { %2374 = dma.done.wait (%p2147_p6), %s1748_s17, 1024  }
 0x53a   : > { %2376 = vsyncadd (%p2147_p6), %s1748_s17, 4294966272  ;;  %s20_s8 = sadd.s32 1, %s2407_s8   ;;  %s3209_s28 = sld [smem:[#allocation6_spill]] }
 0x53b   : > { %p17_p7 = scmp.ge.s32.totalorder %s20_s8, 6   ;;  %s3210_s14 = sld [smem:[#allocation7_spill]] }
 0x53c   : > { %s3211_s30 = sld [smem:[#allocation8_spill]]  ;;  %s3212_s24 = smov %s2383_s25 }
 0x53d   : > { %s3213_s25 = smov %s2387_s26  ;;  %s3214_s26 = smov %s2524_s19 }
 0x53e   : > { %s3215_s27 = smov %s2399_s29  ;;  %19 = sbr.rel (!%p17_p7) target bundleno = 7 (0x7), region = 96 }
 0x541   : > { %s3216_s29 = smov %s3210_s14 }
 0x543   :  { %1753 = vsyncpa [#allocation4], 1 }
 0x544   :  { %1755 = vsyncpa [#allocation4 + $0x1], 1 }

</bundles_post_ra>
